<compile_context>
chip_gen: v6e
topology: v6e:2x2x1
jax: 0.10.0
libtpu: 0.0.40
codegen_flags: <defaults>
</compile_context>

<pallas_src>
import functools

import jax
import jax.numpy as jnp
from jax import lax
from jax.experimental import pallas as pl
from jax.experimental.pallas import tpu as pltpu

_LANE = 128   # vreg lane width
_SUB = 8      # f32 sublane tile


def _ceil_to(x, m):
    return ((x + m - 1) // m) * m


@functools.partial(jax.jit, static_argnames=("weight_dtype", "time_chunk"))
def conditional_rnn_agent_forward_seq(x_seq, latent_seq, h0, params,
                                      *, weight_dtype=jnp.bfloat16, time_chunk=None):
    """Fused multi-timestep forward.

    x_seq:      (T, B, input_dim)
    latent_seq: (T, B, latent_dim)
    h0:         (B, hidden_dim) initial hidden state
    returns     (q_seq: (T, B, n_actions), h_seq: (T, B, hidden_dim)); step t equals the
    PyTorch module applied to (x_seq[t], latent_seq[t]) with h_{t-1}.
    """
    f32 = jnp.float32
    T, B, In = x_seq.shape
    L = latent_seq.shape[-1]
    H = h0.shape[-1]
    A = params["fc2b_w"].shape[0]

    # TODO(synk): hidden_dim / n_actions > 128 would need multi-lane-tile handling.
    assert H <= _LANE and A <= _LANE, "hidden_dim and n_actions must be <= 128"

    In_p = _ceil_to(In, _SUB)
    L_p = _ceil_to(L, _SUB)

    # ---- batch tiling: BT up to 256 (MXU M) and >= 2 tiles when possible (v7x cores) --
    B_p = _ceil_to(B, _SUB)
    if B_p >= 2 * _LANE:
        BT = 2 * _LANE
        B_p = _ceil_to(B_p, BT)
    elif B_p >= 2 * _SUB:
        BT = _ceil_to((B_p + 1) // 2, _SUB)
        B_p = 2 * BT
    else:
        BT = B_p
    num_bt = B_p // BT

    # ---- time chunking: amortize per-grid-step overhead, cap chunk VMEM (~8 MiB) ------
    if time_chunk is None:
        per_t = BT * (In_p + L_p + 2 * _LANE) * 4 * 2   # in/out blocks, double-buffered
        per_t += BT * 3 * _LANE * 4                      # gi scratch
        TC = max(1, min(T, (8 << 20) // max(per_t, 1), 64))
    else:
        TC = max(1, min(int(time_chunk), T))
    T_p = _ceil_to(T, TC)
    n_tc = T_p // TC
    M = TC * BT

    # ---- pad activations (zero pad rows/lanes/steps are harmless, sliced at the end) --
    xp = jnp.zeros((T_p, B_p, In_p), f32).at[:T, :B, :In].set(x_seq.astype(f32))
    lp = jnp.zeros((T_p, B_p, L_p), f32).at[:T, :B, :L].set(latent_seq.astype(f32))
    h0p = jnp.zeros((B_p, _LANE), f32).at[:B, :H].set(h0.astype(f32))

    # ---- weights: lane-padded, gates stacked along lanes (128-aligned blocks) ---------
    def _pad(w_in_out, rows, cols=_LANE):
        k, n = w_in_out.shape
        return jnp.zeros((rows, cols), f32).at[:k, :n].set(w_in_out.astype(f32))

    def _gate_stack(w_3h):  # torch (3H, H) -> (128, 384); gate g in lanes [g*128, g*128+H)
        return jnp.concatenate(
            [_pad(w_3h[g * H:(g + 1) * H, :].T, _LANE) for g in range(3)], axis=1)

    w1 = _pad(params["fc1_w"].T, In_p).astype(weight_dtype)          # (In_p, 128)
    wih = _gate_stack(params["gru_w_ih"]).astype(weight_dtype)        # (128, 384)
    whh = _gate_stack(params["gru_w_hh"]).astype(f32)                 # recurrent path: f32
    w2 = params["fc2a_w"]                                             # (H, H+L)
    w2h = _pad(w2[:, :H].T, _LANE).astype(weight_dtype)               # (128, 128)
    w2l = _pad(w2[:, H:].T, L_p).astype(weight_dtype)                 # (L_p, 128)
    w3 = _pad(params["fc2b_w"].T, _LANE).astype(weight_dtype)         # (128, 128)

    # ---- biases: one (8, 384) f32 buffer; r/z input+hidden biases pre-summed ----------
    bih = params["gru_b_ih"].astype(f32)
    bhh = params["gru_b_hh"].astype(f32)
    b = jnp.zeros((_SUB, 3 * _LANE), f32)
    b = b.at[0, :H].set(params["fc1_b"].astype(f32))
    b = b.at[1, 0:H].set(bih[0:H] + bhh[0:H])                                  # r
    b = b.at[1, _LANE:_LANE + H].set(bih[H:2 * H] + bhh[H:2 * H])              # z
    b = b.at[1, 2 * _LANE:2 * _LANE + H].set(bih[2 * H:3 * H])                 # n (input)
    b = b.at[2, 2 * _LANE:2 * _LANE + H].set(bhh[2 * H:3 * H])                 # n (hidden)
    b = b.at[3, :H].set(params["fc2a_b"].astype(f32))
    b = b.at[4, :A].set(params["fc2b_b"].astype(f32))

    def kernel(x_ref, lat_ref, h0_ref, w1_ref, wih_ref, whh_ref, w2h_ref, w2l_ref,
               w3_ref, b_ref, q_ref, hseq_ref, h_scr, gi_scr):
        c = pl.program_id(1)

        @pl.when(c == 0)
        def _():
            h_scr[...] = h0_ref[...]

        def mm(a, w_ref_):
            w = w_ref_[...]
            return jnp.dot(a.astype(w.dtype), w, preferred_element_type=jnp.float32)

        # --- Stage A: hoisted x-side GEMMs over the whole chunk (M = TC*BT rows) ------
        x = x_ref[...].reshape(M, In_p)
        x1 = jnp.maximum(mm(x, w1_ref) + b_ref[0:1, 0:_LANE], 0.0)     # (M, 128)
        gi = mm(x1, wih_ref) + b_ref[1:2, :]                           # (M, 384), +gate biases
        gi_scr[...] = gi.reshape(TC, BT, 3 * _LANE)

        # --- Stage B: serial GRU recurrence (only the h-dependent matmul remains) -----
        whh_v = whh_ref[...]                                           # (128, 384), f32
        b_hn = b_ref[2:3, 2 * _LANE:3 * _LANE]                         # hoisted out of loop

        def step(t, h):
            g = gi_scr[t]                                              # (BT, 384)
            gh = jnp.dot(h, whh_v, preferred_element_type=jnp.float32)  # (BT, 384)
            r = jax.nn.sigmoid(g[:, 0:_LANE] + gh[:, 0:_LANE])
            z = jax.nn.sigmoid(g[:, _LANE:2 * _LANE] + gh[:, _LANE:2 * _LANE])
            n = jnp.tanh(g[:, 2 * _LANE:] + r * (gh[:, 2 * _LANE:] + b_hn))
            h_new = (1.0 - z) * n + z * h
            hseq_ref[t] = h_new
            return h_new

        h_scr[...] = lax.fori_loop(0, TC, step, h_scr[...], unroll=True)

        # --- Stage C: hoisted fc2 head over the whole chunk (M = TC*BT rows) ----------
        h_all = hseq_ref[...].reshape(M, _LANE)
        lat = lat_ref[...].reshape(M, L_p)
        q1 = jnp.maximum(mm(h_all, w2h_ref) + mm(lat, w2l_ref) + b_ref[3:4, 0:_LANE], 0.0)
        q = mm(q1, w3_ref) + b_ref[4:5, 0:_LANE]
        q_ref[...] = q.reshape(TC, BT, _LANE)

    grid = (num_bt, n_tc)            # batch tiles parallel (v7x megacore), time serial
    q_pad, h_pad = pl.pallas_call(
        kernel,
        out_shape=(
            jax.ShapeDtypeStruct((T_p, B_p, _LANE), f32),
            jax.ShapeDtypeStruct((T_p, B_p, _LANE), f32),
        ),
        grid_spec=pltpu.PrefetchScalarGridSpec(
            num_scalar_prefetch=0,
            grid=grid,
            in_specs=[
                pl.BlockSpec((TC, BT, In_p), lambda bi, c: (c, bi, 0)),
                pl.BlockSpec((TC, BT, L_p), lambda bi, c: (c, bi, 0)),
                pl.BlockSpec((BT, _LANE), lambda bi, c: (bi, 0)),
                pl.BlockSpec((In_p, _LANE), lambda bi, c: (0, 0)),        # w1   (resident)
                pl.BlockSpec((_LANE, 3 * _LANE), lambda bi, c: (0, 0)),   # wih  (resident)
                pl.BlockSpec((_LANE, 3 * _LANE), lambda bi, c: (0, 0)),   # whh  (resident)
                pl.BlockSpec((_LANE, _LANE), lambda bi, c: (0, 0)),       # w2h  (resident)
                pl.BlockSpec((L_p, _LANE), lambda bi, c: (0, 0)),         # w2l  (resident)
                pl.BlockSpec((_LANE, _LANE), lambda bi, c: (0, 0)),       # w3   (resident)
                pl.BlockSpec((_SUB, 3 * _LANE), lambda bi, c: (0, 0)),    # biases (resident)
            ],
            out_specs=[
                pl.BlockSpec((TC, BT, _LANE), lambda bi, c: (c, bi, 0)),
                pl.BlockSpec((TC, BT, _LANE), lambda bi, c: (c, bi, 0)),
            ],
            scratch_shapes=[
                pltpu.VMEM((BT, _LANE), jnp.float32),            # carried hidden (f32)
                pltpu.VMEM((TC, BT, 3 * _LANE), jnp.float32),    # hoisted gate pre-acts
            ],
        ),
        compiler_params=pltpu.CompilerParams(
            dimension_semantics=("parallel", "arbitrary")),
    )(xp, lp, h0p, w1, wih, whh, w2h, w2l, w3, b)

    return q_pad[:T, :B, :A], h_pad[:T, :B, :H]


def conditional_rnn_agent_forward(x, latent, hidden_state, params,
                                  *, weight_dtype=jnp.bfloat16, time_chunk=None):
    """Single-step forward matching the PyTorch module's forward((x, latent), h)."""
    h_in = hidden_state.reshape(-1, hidden_state.shape[-1])
    q_seq, h_seq = conditional_rnn_agent_forward_seq(
        x[None], latent[None], h_in, params,
        weight_dtype=weight_dtype, time_chunk=time_chunk)
    return q_seq[0], h_seq[0]


# ----------------------------- pure-JAX reference --------------------------------- #
def _reference_forward_step(x, latent, h_in, p):
    x1 = jnp.maximum(x @ p["fc1_w"].T + p["fc1_b"], 0.0)
    H = h_in.shape[-1]
    gi = x1 @ p["gru_w_ih"].T + p["gru_b_ih"]
    gh = h_in @ p["gru_w_hh"].T + p["gru_b_hh"]
    r = jax.nn.sigmoid(gi[:, :H] + gh[:, :H])
    z = jax.nn.sigmoid(gi[:, H:2 * H] + gh[:, H:2 * H])
    n = jnp.tanh(gi[:, 2 * H:] + r * gh[:, 2 * H:])
    h = (1.0 - z) * n + z * h_in
    cat = jnp.concatenate([h, latent], axis=-1)
    q1 = jnp.maximum(cat @ p["fc2a_w"].T + p["fc2a_b"], 0.0)
    q = q1 @ p["fc2b_w"].T + p["fc2b_b"]
    return q, h


def _reference_forward_seq(x_seq, latent_seq, h0, params):
    qs, hs, h = [], [], h0
    for t in range(x_seq.shape[0]):
        q, h = _reference_forward_step(x_seq[t], latent_seq[t], h, params)
        qs.append(q)
        hs.append(h)
    return jnp.stack(qs), jnp.stack(hs)


def _init_params(key, input_dim, hidden_dim, latent_dim, n_actions):
    ks = jax.random.split(key, 10)

    def u(k, shape, fan_in):
        bound = 1.0 / jnp.sqrt(fan_in)
        return jax.random.uniform(k, shape, jnp.float32, -bound, bound)

    return {
        "fc1_w": u(ks[0], (hidden_dim, input_dim), input_dim),
        "fc1_b": u(ks[1], (hidden_dim,), input_dim),
        "gru_w_ih": u(ks[2], (3 * hidden_dim, hidden_dim), hidden_dim),
        "gru_b_ih": u(ks[3], (3 * hidden_dim,), hidden_dim),
        "gru_w_hh": u(ks[4], (3 * hidden_dim, hidden_dim), hidden_dim),
        "gru_b_hh": u(ks[5], (3 * hidden_dim,), hidden_dim),
        "fc2a_w": u(ks[6], (hidden_dim, hidden_dim + latent_dim), hidden_dim + latent_dim),
        "fc2a_b": u(ks[7], (hidden_dim,), hidden_dim + latent_dim),
        "fc2b_w": u(ks[8], (n_actions, hidden_dim), hidden_dim),
        "fc2b_b": u(ks[9], (n_actions,), hidden_dim),
    }


if __name__ == "__main__":
    batch, seq_len = 8, 8
    input_dim, hidden_dim, latent_dim, n_actions = 48, 32, 16, 12

    key = jax.random.PRNGKey(0)
    k_p, k_x, k_l = jax.random.split(key, 3)

    params = _init_params(k_p, input_dim, hidden_dim, latent_dim, n_actions)
    x_seq = jax.random.normal(k_x, (seq_len, batch, input_dim), jnp.float32)
    latent_seq = jax.random.normal(k_l, (seq_len, batch, latent_dim), jnp.float32)
    h0 = jnp.zeros((batch, hidden_dim), jnp.float32)   # init_hidden()

    q_ref_seq, h_ref_seq = _reference_forward_seq(x_seq, latent_seq, h0, params)

    # f32 weights: tight check.
    q_seq, h_seq = conditional_rnn_agent_forward_seq(
        x_seq, latent_seq, h0, params, weight_dtype=jnp.float32)
    jax.block_until_ready((q_seq, h_seq))
    assert q_seq.shape == (seq_len, batch, n_actions)
    assert h_seq.shape == (seq_len, batch, hidden_dim)
    assert jnp.allclose(q_seq, q_ref_seq, atol=1e-3, rtol=1e-3)
    assert jnp.allclose(h_seq, h_ref_seq, atol=1e-3, rtol=1e-3)

    # Default (bf16 hoisted weights, f32 recurrent path): loose check.
    q_bf, h_bf = conditional_rnn_agent_forward_seq(x_seq, latent_seq, h0, params)
    jax.block_until_ready((q_bf, h_bf))
    assert float(jnp.max(jnp.abs(q_bf - q_ref_seq))) < 0.1
    assert float(jnp.max(jnp.abs(h_bf - h_ref_seq))) < 0.1

    # Single-step API (module forward signature semantics).
    q0, h0_out = conditional_rnn_agent_forward(
        x_seq[0], latent_seq[0], h0, params, weight_dtype=jnp.float32)
    jax.block_until_ready((q0, h0_out))
    assert jnp.allclose(q0, q_ref_seq[0], atol=1e-3, rtol=1e-3)
    assert jnp.allclose(h0_out, h_ref_seq[0], atol=1e-3, rtol=1e-3)

    # Odd shapes: 2 batch tiles, T not divisible by the time chunk (padding paths).
    b2, t2 = 20, 5
    k_x2, k_l2 = jax.random.split(jax.random.PRNGKey(1), 2)
    x2 = jax.random.normal(k_x2, (t2, b2, input_dim), jnp.float32)
    l2 = jax.random.normal(k_l2, (t2, b2, latent_dim), jnp.float32)
    h02 = jnp.zeros((b2, hidden_dim), jnp.float32)
    q2, h2 = conditional_rnn_agent_forward_seq(
        x2, l2, h02, params, weight_dtype=jnp.float32, time_chunk=4)
    jax.block_until_ready((q2, h2))
    q2_ref, h2_ref = _reference_forward_seq(x2, l2, h02, params)
    assert q2.shape == (t2, b2, n_actions) and h2.shape == (t2, b2, hidden_dim)
    assert jnp.allclose(q2, q2_ref, atol=1e-3, rtol=1e-3)
    assert jnp.allclose(h2, h2_ref, atol=1e-3, rtol=1e-3)

    print("KERNEL_OK")
</pallas_src>

<mosaic_0001>
module attributes {stable_mosaic.version = 11 : i64} {
  func.func @kernel(%arg0: i32, %arg1: i32, %arg2: memref<8x8x48xf32, #tpu.memory_space<vmem>>, %arg3: memref<8x8x16xf32, #tpu.memory_space<vmem>>, %arg4: memref<8x128xf32, #tpu.memory_space<vmem>>, %arg5: memref<48x128xf32, #tpu.memory_space<vmem>>, %arg6: memref<128x384xf32, #tpu.memory_space<vmem>>, %arg7: memref<128x384xf32, #tpu.memory_space<vmem>>, %arg8: memref<128x128xf32, #tpu.memory_space<vmem>>, %arg9: memref<16x128xf32, #tpu.memory_space<vmem>>, %arg10: memref<128x128xf32, #tpu.memory_space<vmem>>, %arg11: memref<8x384xf32, #tpu.memory_space<vmem>>, %arg12: memref<8x8x128xf32, #tpu.memory_space<vmem>>, %arg13: memref<8x8x128xf32, #tpu.memory_space<vmem>>, %arg14: memref<8x128xf32, #tpu.memory_space<vmem>>, %arg15: memref<8x8x384xf32, #tpu.memory_space<vmem>>) attributes {dimension_semantics = [#tpu.dimension_semantics<parallel>, #tpu.dimension_semantics<arbitrary>], iteration_bounds = array<i64: 1, 1>, scalar_prefetch = 0 : i64, scratch_operands = 2 : i64, tpu.core_type = #tpu.core_type<tc>, window_params = [{transform_indices = @transform_0, window_bounds = array<i64: 8, 8, 48>}, {transform_indices = @transform_1, window_bounds = array<i64: 8, 8, 16>}, {transform_indices = @transform_2, window_bounds = array<i64: 8, 128>}, {pipeline_mode = #tpu.pipeline_mode<synchronous>, transform_indices = @transform_3, window_bounds = array<i64: 48, 128>}, {pipeline_mode = #tpu.pipeline_mode<synchronous>, transform_indices = @transform_4, window_bounds = array<i64: 128, 384>}, {pipeline_mode = #tpu.pipeline_mode<synchronous>, transform_indices = @transform_5, window_bounds = array<i64: 128, 384>}, {pipeline_mode = #tpu.pipeline_mode<synchronous>, transform_indices = @transform_6, window_bounds = array<i64: 128, 128>}, {pipeline_mode = #tpu.pipeline_mode<synchronous>, transform_indices = @transform_7, window_bounds = array<i64: 16, 128>}, {pipeline_mode = #tpu.pipeline_mode<synchronous>, transform_indices = @transform_8, window_bounds = array<i64: 128, 128>}, {pipeline_mode = #tpu.pipeline_mode<synchronous>, transform_indices = @transform_9, window_bounds = array<i64: 8, 384>}, {transform_indices = @transform_10, window_bounds = array<i64: 8, 8, 128>}, {transform_indices = @transform_11, window_bounds = array<i64: 8, 8, 128>}]} {
    %c0_i32 = arith.constant 0 : i32
    %0 = arith.cmpi eq, %arg1, %c0_i32 : i32
    %1 = arith.extui %0 : i1 to i32
    %c0_i32_0 = arith.constant 0 : i32
    %2 = arith.cmpi ne, %1, %c0_i32_0 : i32
    scf.if %2 {
      %c0_107 = arith.constant 0 : index
      %c0_108 = arith.constant 0 : index
      %332 = vector.load %arg4[%c0_107, %c0_108] : memref<8x128xf32, #tpu.memory_space<vmem>>, vector<8x128xf32>
      %c0_109 = arith.constant 0 : index
      %c0_110 = arith.constant 0 : index
      %333 = vector.load %arg14[%c0_109, %c0_110] : memref<8x128xf32, #tpu.memory_space<vmem>>, vector<8x128xf32>
      tpu.vector_store %arg14[%c0_109, %c0_110], %332 {strides = array<i32>} : memref<8x128xf32, #tpu.memory_space<vmem>>, vector<8x128xf32>,
    } else {
    }
    %c0 = arith.constant 0 : index
    %c0_1 = arith.constant 0 : index
    %c0_2 = arith.constant 0 : index
    %3 = vector.load %arg2[%c0, %c0_1, %c0_2] : memref<8x8x48xf32, #tpu.memory_space<vmem>>, vector<8x8x48xf32>
    %4 = vector.shape_cast %3 : vector<8x8x48xf32> to vector<64x48xf32>
    %c0_3 = arith.constant 0 : index
    %c0_4 = arith.constant 0 : index
    %5 = vector.load %arg5[%c0_3, %c0_4] : memref<48x128xf32, #tpu.memory_space<vmem>>, vector<48x128xf32>
    %cst = arith.constant dense<0.000000e+00> : vector<64x128xf32>
    %6 = tpu.matmul %4, %5, %cst {dimension_numbers = #tpu.dot_dimension_numbers<[1], [0], [0], [1], [0, 0, 1, 1], [], []>} : vector<64x48xf32>, vector<48x128xf32>, vector<64x128xf32> -> vector<64x128xf32>
    %c0_5 = arith.constant 0 : index
    %c0_6 = arith.constant 0 : index
    %7 = vector.load %arg11[%c0_5, %c0_6] : memref<8x384xf32, #tpu.memory_space<vmem>>, vector<1x128xf32>
    %8 = vector.broadcast %7 : vector<1x128xf32> to vector<64x128xf32>
    %9 = arith.addf %6, %8 : vector<64x128xf32>
    %cst_7 = arith.constant 0.000000e+00 : f32
    %10 = vector.broadcast %cst_7 : f32 to vector<64x128xf32>
    %11 = arith.maximumf %9, %10 : vector<64x128xf32>
    %c0_8 = arith.constant 0 : index
    %c0_9 = arith.constant 0 : index
    %12 = vector.load %arg6[%c0_8, %c0_9] : memref<128x384xf32, #tpu.memory_space<vmem>>, vector<128x384xf32>
    %cst_10 = arith.constant dense<0.000000e+00> : vector<64x384xf32>
    %13 = tpu.matmul %11, %12, %cst_10 {dimension_numbers = #tpu.dot_dimension_numbers<[1], [0], [0], [1], [0, 0, 1, 1], [], []>} : vector<64x128xf32>, vector<128x384xf32>, vector<64x384xf32> -> vector<64x384xf32>
    %c1 = arith.constant 1 : index
    %c0_11 = arith.constant 0 : index
    %14 = vector.load %arg11[%c1, %c0_11] : memref<8x384xf32, #tpu.memory_space<vmem>>, vector<1x384xf32>
    %15 = vector.broadcast %14 : vector<1x384xf32> to vector<64x384xf32>
    %16 = arith.addf %13, %15 : vector<64x384xf32>
    %17 = vector.shape_cast %16 : vector<64x384xf32> to vector<8x8x384xf32>
    %c0_12 = arith.constant 0 : index
    %c0_13 = arith.constant 0 : index
    %c0_14 = arith.constant 0 : index
    %18 = vector.load %arg15[%c0_12, %c0_13, %c0_14] : memref<8x8x384xf32, #tpu.memory_space<vmem>>, vector<8x8x384xf32>
    tpu.vector_store %arg15[%c0_12, %c0_13, %c0_14], %17 {strides = array<i32>} : memref<8x8x384xf32, #tpu.memory_space<vmem>>, vector<8x8x384xf32>,
    %c0_15 = arith.constant 0 : index
    %c0_16 = arith.constant 0 : index
    %19 = vector.load %arg7[%c0_15, %c0_16] : memref<128x384xf32, #tpu.memory_space<vmem>>, vector<128x384xf32>
    %c2 = arith.constant 2 : index
    %c256 = arith.constant 256 : index
    %20 = vector.load %arg11[%c2, %c256] : memref<8x384xf32, #tpu.memory_space<vmem>>, vector<1x128xf32>
    %c0_17 = arith.constant 0 : index
    %c0_18 = arith.constant 0 : index
    %21 = vector.load %arg14[%c0_17, %c0_18] : memref<8x128xf32, #tpu.memory_space<vmem>>, vector<8x128xf32>
    %c0_i32_19 = arith.constant 0 : i32
    %22 = arith.index_cast %c0_i32_19 : i32 to index
    %c0_20 = arith.constant 0 : index
    %c0_21 = arith.constant 0 : index
    %23 = vector.load %arg15[%22, %c0_20, %c0_21] : memref<8x8x384xf32, #tpu.memory_space<vmem>>, vector<1x8x384xf32>
    %24 = vector.shape_cast %23 : vector<1x8x384xf32> to vector<8x384xf32>
    %cst_22 = arith.constant dense<0.000000e+00> : vector<8x384xf32>
    %25 = tpu.matmul %21, %19, %cst_22 {dimension_numbers = #tpu.dot_dimension_numbers<[1], [0], [0], [1], [0, 0, 1, 1], [], []>} : vector<8x128xf32>, vector<128x384xf32>, vector<8x384xf32> -> vector<8x384xf32>
    %26 = vector.extract_strided_slice %24 {offsets = [0, 0], sizes = [8, 128], strides = [1, 1]} : vector<8x384xf32> to vector<8x128xf32>
    %27 = vector.extract_strided_slice %25 {offsets = [0, 0], sizes = [8, 128], strides = [1, 1]} : vector<8x384xf32> to vector<8x128xf32>
    %28 = arith.addf %26, %27 : vector<8x128xf32>
    %29 = arith.negf %28 : vector<8x128xf32>
    %30 = math.exp %29 : vector<8x128xf32>
    %cst_23 = arith.constant 1.000000e+00 : f32
    %31 = vector.broadcast %cst_23 : f32 to vector<8x128xf32>
    %32 = arith.addf %31, %30 : vector<8x128xf32>
    %33 = arith.divf %31, %32 : vector<8x128xf32>
    %34 = vector.extract_strided_slice %24 {offsets = [0, 128], sizes = [8, 128], strides = [1, 1]} : vector<8x384xf32> to vector<8x128xf32>
    %35 = vector.extract_strided_slice %25 {offsets = [0, 128], sizes = [8, 128], strides = [1, 1]} : vector<8x384xf32> to vector<8x128xf32>
    %36 = arith.addf %34, %35 : vector<8x128xf32>
    %37 = arith.negf %36 : vector<8x128xf32>
    %38 = math.exp %37 : vector<8x128xf32>
    %cst_24 = arith.constant 1.000000e+00 : f32
    %39 = vector.broadcast %cst_24 : f32 to vector<8x128xf32>
    %40 = arith.addf %39, %38 : vector<8x128xf32>
    %41 = arith.divf %39, %40 : vector<8x128xf32>
    %42 = vector.extract_strided_slice %24 {offsets = [0, 256], sizes = [8, 128], strides = [1, 1]} : vector<8x384xf32> to vector<8x128xf32>
    %43 = vector.extract_strided_slice %25 {offsets = [0, 256], sizes = [8, 128], strides = [1, 1]} : vector<8x384xf32> to vector<8x128xf32>
    %44 = vector.broadcast %20 : vector<1x128xf32> to vector<8x128xf32>
    %45 = arith.addf %43, %44 : vector<8x128xf32>
    %46 = arith.mulf %33, %45 : vector<8x128xf32>
    %47 = arith.addf %42, %46 : vector<8x128xf32>
    %48 = math.tanh %47 : vector<8x128xf32>
    %cst_25 = arith.constant 1.000000e+00 : f32
    %49 = vector.broadcast %cst_25 : f32 to vector<8x128xf32>
    %50 = arith.subf %49, %41 : vector<8x128xf32>
    %51 = arith.mulf %50, %48 : vector<8x128xf32>
    %52 = arith.mulf %41, %21 : vector<8x128xf32>
    %53 = arith.addf %51, %52 : vector<8x128xf32>
    %54 = arith.index_cast %c0_i32_19 : i32 to index
    %c0_26 = arith.constant 0 : index
    %c0_27 = arith.constant 0 : index
    %55 = vector.load %arg13[%54, %c0_26, %c0_27] : memref<8x8x128xf32, #tpu.memory_space<vmem>>, vector<1x8x128xf32>
    %56 = vector.shape_cast %55 : vector<1x8x128xf32> to vector<8x128xf32>
    %57 = vector.shape_cast %53 : vector<8x128xf32> to vector<1x8x128xf32>
    tpu.vector_store %arg13[%54, %c0_26, %c0_27], %57 {strides = array<i32>} : memref<8x8x128xf32, #tpu.memory_space<vmem>>, vector<1x8x128xf32>,
    %c1_i32 = arith.constant 1 : i32
    %58 = arith.index_cast %c1_i32 : i32 to index
    %c0_28 = arith.constant 0 : index
    %c0_29 = arith.constant 0 : index
    %59 = vector.load %arg15[%58, %c0_28, %c0_29] : memref<8x8x384xf32, #tpu.memory_space<vmem>>, vector<1x8x384xf32>
    %60 = vector.shape_cast %59 : vector<1x8x384xf32> to vector<8x384xf32>
    %cst_30 = arith.constant dense<0.000000e+00> : vector<8x384xf32>
    %61 = tpu.matmul %53, %19, %cst_30 {dimension_numbers = #tpu.dot_dimension_numbers<[1], [0], [0], [1], [0, 0, 1, 1], [], []>} : vector<8x128xf32>, vector<128x384xf32>, vector<8x384xf32> -> vector<8x384xf32>
    %62 = vector.extract_strided_slice %60 {offsets = [0, 0], sizes = [8, 128], strides = [1, 1]} : vector<8x384xf32> to vector<8x128xf32>
    %63 = vector.extract_strided_slice %61 {offsets = [0, 0], sizes = [8, 128], strides = [1, 1]} : vector<8x384xf32> to vector<8x128xf32>
    %64 = arith.addf %62, %63 : vector<8x128xf32>
    %65 = arith.negf %64 : vector<8x128xf32>
    %66 = math.exp %65 : vector<8x128xf32>
    %cst_31 = arith.constant 1.000000e+00 : f32
    %67 = vector.broadcast %cst_31 : f32 to vector<8x128xf32>
    %68 = arith.addf %67, %66 : vector<8x128xf32>
    %69 = arith.divf %67, %68 : vector<8x128xf32>
    %70 = vector.extract_strided_slice %60 {offsets = [0, 128], sizes = [8, 128], strides = [1, 1]} : vector<8x384xf32> to vector<8x128xf32>
    %71 = vector.extract_strided_slice %61 {offsets = [0, 128], sizes = [8, 128], strides = [1, 1]} : vector<8x384xf32> to vector<8x128xf32>
    %72 = arith.addf %70, %71 : vector<8x128xf32>
    %73 = arith.negf %72 : vector<8x128xf32>
    %74 = math.exp %73 : vector<8x128xf32>
    %cst_32 = arith.constant 1.000000e+00 : f32
    %75 = vector.broadcast %cst_32 : f32 to vector<8x128xf32>
    %76 = arith.addf %75, %74 : vector<8x128xf32>
    %77 = arith.divf %75, %76 : vector<8x128xf32>
    %78 = vector.extract_strided_slice %60 {offsets = [0, 256], sizes = [8, 128], strides = [1, 1]} : vector<8x384xf32> to vector<8x128xf32>
    %79 = vector.extract_strided_slice %61 {offsets = [0, 256], sizes = [8, 128], strides = [1, 1]} : vector<8x384xf32> to vector<8x128xf32>
    %80 = vector.broadcast %20 : vector<1x128xf32> to vector<8x128xf32>
    %81 = arith.addf %79, %80 : vector<8x128xf32>
    %82 = arith.mulf %69, %81 : vector<8x128xf32>
    %83 = arith.addf %78, %82 : vector<8x128xf32>
    %84 = math.tanh %83 : vector<8x128xf32>
    %cst_33 = arith.constant 1.000000e+00 : f32
    %85 = vector.broadcast %cst_33 : f32 to vector<8x128xf32>
    %86 = arith.subf %85, %77 : vector<8x128xf32>
    %87 = arith.mulf %86, %84 : vector<8x128xf32>
    %88 = arith.mulf %77, %53 : vector<8x128xf32>
    %89 = arith.addf %87, %88 : vector<8x128xf32>
    %90 = arith.index_cast %c1_i32 : i32 to index
    %c0_34 = arith.constant 0 : index
    %c0_35 = arith.constant 0 : index
    %91 = vector.load %arg13[%90, %c0_34, %c0_35] : memref<8x8x128xf32, #tpu.memory_space<vmem>>, vector<1x8x128xf32>
    %92 = vector.shape_cast %91 : vector<1x8x128xf32> to vector<8x128xf32>
    %93 = vector.shape_cast %89 : vector<8x128xf32> to vector<1x8x128xf32>
    tpu.vector_store %arg13[%90, %c0_34, %c0_35], %93 {strides = array<i32>} : memref<8x8x128xf32, #tpu.memory_space<vmem>>, vector<1x8x128xf32>,
    %c2_i32 = arith.constant 2 : i32
    %94 = arith.index_cast %c2_i32 : i32 to index
    %c0_36 = arith.constant 0 : index
    %c0_37 = arith.constant 0 : index
    %95 = vector.load %arg15[%94, %c0_36, %c0_37] : memref<8x8x384xf32, #tpu.memory_space<vmem>>, vector<1x8x384xf32>
    %96 = vector.shape_cast %95 : vector<1x8x384xf32> to vector<8x384xf32>
    %cst_38 = arith.constant dense<0.000000e+00> : vector<8x384xf32>
    %97 = tpu.matmul %89, %19, %cst_38 {dimension_numbers = #tpu.dot_dimension_numbers<[1], [0], [0], [1], [0, 0, 1, 1], [], []>} : vector<8x128xf32>, vector<128x384xf32>, vector<8x384xf32> -> vector<8x384xf32>
    %98 = vector.extract_strided_slice %96 {offsets = [0, 0], sizes = [8, 128], strides = [1, 1]} : vector<8x384xf32> to vector<8x128xf32>
    %99 = vector.extract_strided_slice %97 {offsets = [0, 0], sizes = [8, 128], strides = [1, 1]} : vector<8x384xf32> to vector<8x128xf32>
    %100 = arith.addf %98, %99 : vector<8x128xf32>
    %101 = arith.negf %100 : vector<8x128xf32>
    %102 = math.exp %101 : vector<8x128xf32>
    %cst_39 = arith.constant 1.000000e+00 : f32
    %103 = vector.broadcast %cst_39 : f32 to vector<8x128xf32>
    %104 = arith.addf %103, %102 : vector<8x128xf32>
    %105 = arith.divf %103, %104 : vector<8x128xf32>
    %106 = vector.extract_strided_slice %96 {offsets = [0, 128], sizes = [8, 128], strides = [1, 1]} : vector<8x384xf32> to vector<8x128xf32>
    %107 = vector.extract_strided_slice %97 {offsets = [0, 128], sizes = [8, 128], strides = [1, 1]} : vector<8x384xf32> to vector<8x128xf32>
    %108 = arith.addf %106, %107 : vector<8x128xf32>
    %109 = arith.negf %108 : vector<8x128xf32>
    %110 = math.exp %109 : vector<8x128xf32>
    %cst_40 = arith.constant 1.000000e+00 : f32
    %111 = vector.broadcast %cst_40 : f32 to vector<8x128xf32>
    %112 = arith.addf %111, %110 : vector<8x128xf32>
    %113 = arith.divf %111, %112 : vector<8x128xf32>
    %114 = vector.extract_strided_slice %96 {offsets = [0, 256], sizes = [8, 128], strides = [1, 1]} : vector<8x384xf32> to vector<8x128xf32>
    %115 = vector.extract_strided_slice %97 {offsets = [0, 256], sizes = [8, 128], strides = [1, 1]} : vector<8x384xf32> to vector<8x128xf32>
    %116 = vector.broadcast %20 : vector<1x128xf32> to vector<8x128xf32>
    %117 = arith.addf %115, %116 : vector<8x128xf32>
    %118 = arith.mulf %105, %117 : vector<8x128xf32>
    %119 = arith.addf %114, %118 : vector<8x128xf32>
    %120 = math.tanh %119 : vector<8x128xf32>
    %cst_41 = arith.constant 1.000000e+00 : f32
    %121 = vector.broadcast %cst_41 : f32 to vector<8x128xf32>
    %122 = arith.subf %121, %113 : vector<8x128xf32>
    %123 = arith.mulf %122, %120 : vector<8x128xf32>
    %124 = arith.mulf %113, %89 : vector<8x128xf32>
    %125 = arith.addf %123, %124 : vector<8x128xf32>
    %126 = arith.index_cast %c2_i32 : i32 to index
    %c0_42 = arith.constant 0 : index
    %c0_43 = arith.constant 0 : index
    %127 = vector.load %arg13[%126, %c0_42, %c0_43] : memref<8x8x128xf32, #tpu.memory_space<vmem>>, vector<1x8x128xf32>
    %128 = vector.shape_cast %127 : vector<1x8x128xf32> to vector<8x128xf32>
    %129 = vector.shape_cast %125 : vector<8x128xf32> to vector<1x8x128xf32>
    tpu.vector_store %arg13[%126, %c0_42, %c0_43], %129 {strides = array<i32>} : memref<8x8x128xf32, #tpu.memory_space<vmem>>, vector<1x8x128xf32>,
    %c3_i32 = arith.constant 3 : i32
    %130 = arith.index_cast %c3_i32 : i32 to index
    %c0_44 = arith.constant 0 : index
    %c0_45 = arith.constant 0 : index
    %131 = vector.load %arg15[%130, %c0_44, %c0_45] : memref<8x8x384xf32, #tpu.memory_space<vmem>>, vector<1x8x384xf32>
    %132 = vector.shape_cast %131 : vector<1x8x384xf32> to vector<8x384xf32>
    %cst_46 = arith.constant dense<0.000000e+00> : vector<8x384xf32>
    %133 = tpu.matmul %125, %19, %cst_46 {dimension_numbers = #tpu.dot_dimension_numbers<[1], [0], [0], [1], [0, 0, 1, 1], [], []>} : vector<8x128xf32>, vector<128x384xf32>, vector<8x384xf32> -> vector<8x384xf32>
    %134 = vector.extract_strided_slice %132 {offsets = [0, 0], sizes = [8, 128], strides = [1, 1]} : vector<8x384xf32> to vector<8x128xf32>
    %135 = vector.extract_strided_slice %133 {offsets = [0, 0], sizes = [8, 128], strides = [1, 1]} : vector<8x384xf32> to vector<8x128xf32>
    %136 = arith.addf %134, %135 : vector<8x128xf32>
    %137 = arith.negf %136 : vector<8x128xf32>
    %138 = math.exp %137 : vector<8x128xf32>
    %cst_47 = arith.constant 1.000000e+00 : f32
    %139 = vector.broadcast %cst_47 : f32 to vector<8x128xf32>
    %140 = arith.addf %139, %138 : vector<8x128xf32>
    %141 = arith.divf %139, %140 : vector<8x128xf32>
    %142 = vector.extract_strided_slice %132 {offsets = [0, 128], sizes = [8, 128], strides = [1, 1]} : vector<8x384xf32> to vector<8x128xf32>
    %143 = vector.extract_strided_slice %133 {offsets = [0, 128], sizes = [8, 128], strides = [1, 1]} : vector<8x384xf32> to vector<8x128xf32>
    %144 = arith.addf %142, %143 : vector<8x128xf32>
    %145 = arith.negf %144 : vector<8x128xf32>
    %146 = math.exp %145 : vector<8x128xf32>
    %cst_48 = arith.constant 1.000000e+00 : f32
    %147 = vector.broadcast %cst_48 : f32 to vector<8x128xf32>
    %148 = arith.addf %147, %146 : vector<8x128xf32>
    %149 = arith.divf %147, %148 : vector<8x128xf32>
    %150 = vector.extract_strided_slice %132 {offsets = [0, 256], sizes = [8, 128], strides = [1, 1]} : vector<8x384xf32> to vector<8x128xf32>
    %151 = vector.extract_strided_slice %133 {offsets = [0, 256], sizes = [8, 128], strides = [1, 1]} : vector<8x384xf32> to vector<8x128xf32>
    %152 = vector.broadcast %20 : vector<1x128xf32> to vector<8x128xf32>
    %153 = arith.addf %151, %152 : vector<8x128xf32>
    %154 = arith.mulf %141, %153 : vector<8x128xf32>
    %155 = arith.addf %150, %154 : vector<8x128xf32>
    %156 = math.tanh %155 : vector<8x128xf32>
    %cst_49 = arith.constant 1.000000e+00 : f32
    %157 = vector.broadcast %cst_49 : f32 to vector<8x128xf32>
    %158 = arith.subf %157, %149 : vector<8x128xf32>
    %159 = arith.mulf %158, %156 : vector<8x128xf32>
    %160 = arith.mulf %149, %125 : vector<8x128xf32>
    %161 = arith.addf %159, %160 : vector<8x128xf32>
    %162 = arith.index_cast %c3_i32 : i32 to index
    %c0_50 = arith.constant 0 : index
    %c0_51 = arith.constant 0 : index
    %163 = vector.load %arg13[%162, %c0_50, %c0_51] : memref<8x8x128xf32, #tpu.memory_space<vmem>>, vector<1x8x128xf32>
    %164 = vector.shape_cast %163 : vector<1x8x128xf32> to vector<8x128xf32>
    %165 = vector.shape_cast %161 : vector<8x128xf32> to vector<1x8x128xf32>
    tpu.vector_store %arg13[%162, %c0_50, %c0_51], %165 {strides = array<i32>} : memref<8x8x128xf32, #tpu.memory_space<vmem>>, vector<1x8x128xf32>,
    %c4_i32 = arith.constant 4 : i32
    %166 = arith.index_cast %c4_i32 : i32 to index
    %c0_52 = arith.constant 0 : index
    %c0_53 = arith.constant 0 : index
    %167 = vector.load %arg15[%166, %c0_52, %c0_53] : memref<8x8x384xf32, #tpu.memory_space<vmem>>, vector<1x8x384xf32>
    %168 = vector.shape_cast %167 : vector<1x8x384xf32> to vector<8x384xf32>
    %cst_54 = arith.constant dense<0.000000e+00> : vector<8x384xf32>
    %169 = tpu.matmul %161, %19, %cst_54 {dimension_numbers = #tpu.dot_dimension_numbers<[1], [0], [0], [1], [0, 0, 1, 1], [], []>} : vector<8x128xf32>, vector<128x384xf32>, vector<8x384xf32> -> vector<8x384xf32>
    %170 = vector.extract_strided_slice %168 {offsets = [0, 0], sizes = [8, 128], strides = [1, 1]} : vector<8x384xf32> to vector<8x128xf32>
    %171 = vector.extract_strided_slice %169 {offsets = [0, 0], sizes = [8, 128], strides = [1, 1]} : vector<8x384xf32> to vector<8x128xf32>
    %172 = arith.addf %170, %171 : vector<8x128xf32>
    %173 = arith.negf %172 : vector<8x128xf32>
    %174 = math.exp %173 : vector<8x128xf32>
    %cst_55 = arith.constant 1.000000e+00 : f32
    %175 = vector.broadcast %cst_55 : f32 to vector<8x128xf32>
    %176 = arith.addf %175, %174 : vector<8x128xf32>
    %177 = arith.divf %175, %176 : vector<8x128xf32>
    %178 = vector.extract_strided_slice %168 {offsets = [0, 128], sizes = [8, 128], strides = [1, 1]} : vector<8x384xf32> to vector<8x128xf32>
    %179 = vector.extract_strided_slice %169 {offsets = [0, 128], sizes = [8, 128], strides = [1, 1]} : vector<8x384xf32> to vector<8x128xf32>
    %180 = arith.addf %178, %179 : vector<8x128xf32>
    %181 = arith.negf %180 : vector<8x128xf32>
    %182 = math.exp %181 : vector<8x128xf32>
    %cst_56 = arith.constant 1.000000e+00 : f32
    %183 = vector.broadcast %cst_56 : f32 to vector<8x128xf32>
    %184 = arith.addf %183, %182 : vector<8x128xf32>
    %185 = arith.divf %183, %184 : vector<8x128xf32>
    %186 = vector.extract_strided_slice %168 {offsets = [0, 256], sizes = [8, 128], strides = [1, 1]} : vector<8x384xf32> to vector<8x128xf32>
    %187 = vector.extract_strided_slice %169 {offsets = [0, 256], sizes = [8, 128], strides = [1, 1]} : vector<8x384xf32> to vector<8x128xf32>
    %188 = vector.broadcast %20 : vector<1x128xf32> to vector<8x128xf32>
    %189 = arith.addf %187, %188 : vector<8x128xf32>
    %190 = arith.mulf %177, %189 : vector<8x128xf32>
    %191 = arith.addf %186, %190 : vector<8x128xf32>
    %192 = math.tanh %191 : vector<8x128xf32>
    %cst_57 = arith.constant 1.000000e+00 : f32
    %193 = vector.broadcast %cst_57 : f32 to vector<8x128xf32>
    %194 = arith.subf %193, %185 : vector<8x128xf32>
    %195 = arith.mulf %194, %192 : vector<8x128xf32>
    %196 = arith.mulf %185, %161 : vector<8x128xf32>
    %197 = arith.addf %195, %196 : vector<8x128xf32>
    %198 = arith.index_cast %c4_i32 : i32 to index
    %c0_58 = arith.constant 0 : index
    %c0_59 = arith.constant 0 : index
    %199 = vector.load %arg13[%198, %c0_58, %c0_59] : memref<8x8x128xf32, #tpu.memory_space<vmem>>, vector<1x8x128xf32>
    %200 = vector.shape_cast %199 : vector<1x8x128xf32> to vector<8x128xf32>
    %201 = vector.shape_cast %197 : vector<8x128xf32> to vector<1x8x128xf32>
    tpu.vector_store %arg13[%198, %c0_58, %c0_59], %201 {strides = array<i32>} : memref<8x8x128xf32, #tpu.memory_space<vmem>>, vector<1x8x128xf32>,
    %c5_i32 = arith.constant 5 : i32
    %202 = arith.index_cast %c5_i32 : i32 to index
    %c0_60 = arith.constant 0 : index
    %c0_61 = arith.constant 0 : index
    %203 = vector.load %arg15[%202, %c0_60, %c0_61] : memref<8x8x384xf32, #tpu.memory_space<vmem>>, vector<1x8x384xf32>
    %204 = vector.shape_cast %203 : vector<1x8x384xf32> to vector<8x384xf32>
    %cst_62 = arith.constant dense<0.000000e+00> : vector<8x384xf32>
    %205 = tpu.matmul %197, %19, %cst_62 {dimension_numbers = #tpu.dot_dimension_numbers<[1], [0], [0], [1], [0, 0, 1, 1], [], []>} : vector<8x128xf32>, vector<128x384xf32>, vector<8x384xf32> -> vector<8x384xf32>
    %206 = vector.extract_strided_slice %204 {offsets = [0, 0], sizes = [8, 128], strides = [1, 1]} : vector<8x384xf32> to vector<8x128xf32>
    %207 = vector.extract_strided_slice %205 {offsets = [0, 0], sizes = [8, 128], strides = [1, 1]} : vector<8x384xf32> to vector<8x128xf32>
    %208 = arith.addf %206, %207 : vector<8x128xf32>
    %209 = arith.negf %208 : vector<8x128xf32>
    %210 = math.exp %209 : vector<8x128xf32>
    %cst_63 = arith.constant 1.000000e+00 : f32
    %211 = vector.broadcast %cst_63 : f32 to vector<8x128xf32>
    %212 = arith.addf %211, %210 : vector<8x128xf32>
    %213 = arith.divf %211, %212 : vector<8x128xf32>
    %214 = vector.extract_strided_slice %204 {offsets = [0, 128], sizes = [8, 128], strides = [1, 1]} : vector<8x384xf32> to vector<8x128xf32>
    %215 = vector.extract_strided_slice %205 {offsets = [0, 128], sizes = [8, 128], strides = [1, 1]} : vector<8x384xf32> to vector<8x128xf32>
    %216 = arith.addf %214, %215 : vector<8x128xf32>
    %217 = arith.negf %216 : vector<8x128xf32>
    %218 = math.exp %217 : vector<8x128xf32>
    %cst_64 = arith.constant 1.000000e+00 : f32
    %219 = vector.broadcast %cst_64 : f32 to vector<8x128xf32>
    %220 = arith.addf %219, %218 : vector<8x128xf32>
    %221 = arith.divf %219, %220 : vector<8x128xf32>
    %222 = vector.extract_strided_slice %204 {offsets = [0, 256], sizes = [8, 128], strides = [1, 1]} : vector<8x384xf32> to vector<8x128xf32>
    %223 = vector.extract_strided_slice %205 {offsets = [0, 256], sizes = [8, 128], strides = [1, 1]} : vector<8x384xf32> to vector<8x128xf32>
    %224 = vector.broadcast %20 : vector<1x128xf32> to vector<8x128xf32>
    %225 = arith.addf %223, %224 : vector<8x128xf32>
    %226 = arith.mulf %213, %225 : vector<8x128xf32>
    %227 = arith.addf %222, %226 : vector<8x128xf32>
    %228 = math.tanh %227 : vector<8x128xf32>
    %cst_65 = arith.constant 1.000000e+00 : f32
    %229 = vector.broadcast %cst_65 : f32 to vector<8x128xf32>
    %230 = arith.subf %229, %221 : vector<8x128xf32>
    %231 = arith.mulf %230, %228 : vector<8x128xf32>
    %232 = arith.mulf %221, %197 : vector<8x128xf32>
    %233 = arith.addf %231, %232 : vector<8x128xf32>
    %234 = arith.index_cast %c5_i32 : i32 to index
    %c0_66 = arith.constant 0 : index
    %c0_67 = arith.constant 0 : index
    %235 = vector.load %arg13[%234, %c0_66, %c0_67] : memref<8x8x128xf32, #tpu.memory_space<vmem>>, vector<1x8x128xf32>
    %236 = vector.shape_cast %235 : vector<1x8x128xf32> to vector<8x128xf32>
    %237 = vector.shape_cast %233 : vector<8x128xf32> to vector<1x8x128xf32>
    tpu.vector_store %arg13[%234, %c0_66, %c0_67], %237 {strides = array<i32>} : memref<8x8x128xf32, #tpu.memory_space<vmem>>, vector<1x8x128xf32>,
    %c6_i32 = arith.constant 6 : i32
    %238 = arith.index_cast %c6_i32 : i32 to index
    %c0_68 = arith.constant 0 : index
    %c0_69 = arith.constant 0 : index
    %239 = vector.load %arg15[%238, %c0_68, %c0_69] : memref<8x8x384xf32, #tpu.memory_space<vmem>>, vector<1x8x384xf32>
    %240 = vector.shape_cast %239 : vector<1x8x384xf32> to vector<8x384xf32>
    %cst_70 = arith.constant dense<0.000000e+00> : vector<8x384xf32>
    %241 = tpu.matmul %233, %19, %cst_70 {dimension_numbers = #tpu.dot_dimension_numbers<[1], [0], [0], [1], [0, 0, 1, 1], [], []>} : vector<8x128xf32>, vector<128x384xf32>, vector<8x384xf32> -> vector<8x384xf32>
    %242 = vector.extract_strided_slice %240 {offsets = [0, 0], sizes = [8, 128], strides = [1, 1]} : vector<8x384xf32> to vector<8x128xf32>
    %243 = vector.extract_strided_slice %241 {offsets = [0, 0], sizes = [8, 128], strides = [1, 1]} : vector<8x384xf32> to vector<8x128xf32>
    %244 = arith.addf %242, %243 : vector<8x128xf32>
    %245 = arith.negf %244 : vector<8x128xf32>
    %246 = math.exp %245 : vector<8x128xf32>
    %cst_71 = arith.constant 1.000000e+00 : f32
    %247 = vector.broadcast %cst_71 : f32 to vector<8x128xf32>
    %248 = arith.addf %247, %246 : vector<8x128xf32>
    %249 = arith.divf %247, %248 : vector<8x128xf32>
    %250 = vector.extract_strided_slice %240 {offsets = [0, 128], sizes = [8, 128], strides = [1, 1]} : vector<8x384xf32> to vector<8x128xf32>
    %251 = vector.extract_strided_slice %241 {offsets = [0, 128], sizes = [8, 128], strides = [1, 1]} : vector<8x384xf32> to vector<8x128xf32>
    %252 = arith.addf %250, %251 : vector<8x128xf32>
    %253 = arith.negf %252 : vector<8x128xf32>
    %254 = math.exp %253 : vector<8x128xf32>
    %cst_72 = arith.constant 1.000000e+00 : f32
    %255 = vector.broadcast %cst_72 : f32 to vector<8x128xf32>
    %256 = arith.addf %255, %254 : vector<8x128xf32>
    %257 = arith.divf %255, %256 : vector<8x128xf32>
    %258 = vector.extract_strided_slice %240 {offsets = [0, 256], sizes = [8, 128], strides = [1, 1]} : vector<8x384xf32> to vector<8x128xf32>
    %259 = vector.extract_strided_slice %241 {offsets = [0, 256], sizes = [8, 128], strides = [1, 1]} : vector<8x384xf32> to vector<8x128xf32>
    %260 = vector.broadcast %20 : vector<1x128xf32> to vector<8x128xf32>
    %261 = arith.addf %259, %260 : vector<8x128xf32>
    %262 = arith.mulf %249, %261 : vector<8x128xf32>
    %263 = arith.addf %258, %262 : vector<8x128xf32>
    %264 = math.tanh %263 : vector<8x128xf32>
    %cst_73 = arith.constant 1.000000e+00 : f32
    %265 = vector.broadcast %cst_73 : f32 to vector<8x128xf32>
    %266 = arith.subf %265, %257 : vector<8x128xf32>
    %267 = arith.mulf %266, %264 : vector<8x128xf32>
    %268 = arith.mulf %257, %233 : vector<8x128xf32>
    %269 = arith.addf %267, %268 : vector<8x128xf32>
    %270 = arith.index_cast %c6_i32 : i32 to index
    %c0_74 = arith.constant 0 : index
    %c0_75 = arith.constant 0 : index
    %271 = vector.load %arg13[%270, %c0_74, %c0_75] : memref<8x8x128xf32, #tpu.memory_space<vmem>>, vector<1x8x128xf32>
    %272 = vector.shape_cast %271 : vector<1x8x128xf32> to vector<8x128xf32>
    %273 = vector.shape_cast %269 : vector<8x128xf32> to vector<1x8x128xf32>
    tpu.vector_store %arg13[%270, %c0_74, %c0_75], %273 {strides = array<i32>} : memref<8x8x128xf32, #tpu.memory_space<vmem>>, vector<1x8x128xf32>,
    %c7_i32 = arith.constant 7 : i32
    %274 = arith.index_cast %c7_i32 : i32 to index
    %c0_76 = arith.constant 0 : index
    %c0_77 = arith.constant 0 : index
    %275 = vector.load %arg15[%274, %c0_76, %c0_77] : memref<8x8x384xf32, #tpu.memory_space<vmem>>, vector<1x8x384xf32>
    %276 = vector.shape_cast %275 : vector<1x8x384xf32> to vector<8x384xf32>
    %cst_78 = arith.constant dense<0.000000e+00> : vector<8x384xf32>
    %277 = tpu.matmul %269, %19, %cst_78 {dimension_numbers = #tpu.dot_dimension_numbers<[1], [0], [0], [1], [0, 0, 1, 1], [], []>} : vector<8x128xf32>, vector<128x384xf32>, vector<8x384xf32> -> vector<8x384xf32>
    %278 = vector.extract_strided_slice %276 {offsets = [0, 0], sizes = [8, 128], strides = [1, 1]} : vector<8x384xf32> to vector<8x128xf32>
    %279 = vector.extract_strided_slice %277 {offsets = [0, 0], sizes = [8, 128], strides = [1, 1]} : vector<8x384xf32> to vector<8x128xf32>
    %280 = arith.addf %278, %279 : vector<8x128xf32>
    %281 = arith.negf %280 : vector<8x128xf32>
    %282 = math.exp %281 : vector<8x128xf32>
    %cst_79 = arith.constant 1.000000e+00 : f32
    %283 = vector.broadcast %cst_79 : f32 to vector<8x128xf32>
    %284 = arith.addf %283, %282 : vector<8x128xf32>
    %285 = arith.divf %283, %284 : vector<8x128xf32>
    %286 = vector.extract_strided_slice %276 {offsets = [0, 128], sizes = [8, 128], strides = [1, 1]} : vector<8x384xf32> to vector<8x128xf32>
    %287 = vector.extract_strided_slice %277 {offsets = [0, 128], sizes = [8, 128], strides = [1, 1]} : vector<8x384xf32> to vector<8x128xf32>
    %288 = arith.addf %286, %287 : vector<8x128xf32>
    %289 = arith.negf %288 : vector<8x128xf32>
    %290 = math.exp %289 : vector<8x128xf32>
    %cst_80 = arith.constant 1.000000e+00 : f32
    %291 = vector.broadcast %cst_80 : f32 to vector<8x128xf32>
    %292 = arith.addf %291, %290 : vector<8x128xf32>
    %293 = arith.divf %291, %292 : vector<8x128xf32>
    %294 = vector.extract_strided_slice %276 {offsets = [0, 256], sizes = [8, 128], strides = [1, 1]} : vector<8x384xf32> to vector<8x128xf32>
    %295 = vector.extract_strided_slice %277 {offsets = [0, 256], sizes = [8, 128], strides = [1, 1]} : vector<8x384xf32> to vector<8x128xf32>
    %296 = vector.broadcast %20 : vector<1x128xf32> to vector<8x128xf32>
    %297 = arith.addf %295, %296 : vector<8x128xf32>
    %298 = arith.mulf %285, %297 : vector<8x128xf32>
    %299 = arith.addf %294, %298 : vector<8x128xf32>
    %300 = math.tanh %299 : vector<8x128xf32>
    %cst_81 = arith.constant 1.000000e+00 : f32
    %301 = vector.broadcast %cst_81 : f32 to vector<8x128xf32>
    %302 = arith.subf %301, %293 : vector<8x128xf32>
    %303 = arith.mulf %302, %300 : vector<8x128xf32>
    %304 = arith.mulf %293, %269 : vector<8x128xf32>
    %305 = arith.addf %303, %304 : vector<8x128xf32>
    %306 = arith.index_cast %c7_i32 : i32 to index
    %c0_82 = arith.constant 0 : index
    %c0_83 = arith.constant 0 : index
    %307 = vector.load %arg13[%306, %c0_82, %c0_83] : memref<8x8x128xf32, #tpu.memory_space<vmem>>, vector<1x8x128xf32>
    %308 = vector.shape_cast %307 : vector<1x8x128xf32> to vector<8x128xf32>
    %309 = vector.shape_cast %305 : vector<8x128xf32> to vector<1x8x128xf32>
    tpu.vector_store %arg13[%306, %c0_82, %c0_83], %309 {strides = array<i32>} : memref<8x8x128xf32, #tpu.memory_space<vmem>>, vector<1x8x128xf32>,
    %c8_i32 = arith.constant 8 : i32
    %c0_84 = arith.constant 0 : index
    %c0_85 = arith.constant 0 : index
    %310 = vector.load %arg14[%c0_84, %c0_85] : memref<8x128xf32, #tpu.memory_space<vmem>>, vector<8x128xf32>
    tpu.vector_store %arg14[%c0_84, %c0_85], %305 {strides = array<i32>} : memref<8x128xf32, #tpu.memory_space<vmem>>, vector<8x128xf32>,
    %c0_86 = arith.constant 0 : index
    %c0_87 = arith.constant 0 : index
    %c0_88 = arith.constant 0 : index
    %311 = vector.load %arg13[%c0_86, %c0_87, %c0_88] : memref<8x8x128xf32, #tpu.memory_space<vmem>>, vector<8x8x128xf32>
    %312 = vector.shape_cast %311 : vector<8x8x128xf32> to vector<64x128xf32>
    %c0_89 = arith.constant 0 : index
    %c0_90 = arith.constant 0 : index
    %c0_91 = arith.constant 0 : index
    %313 = vector.load %arg3[%c0_89, %c0_90, %c0_91] : memref<8x8x16xf32, #tpu.memory_space<vmem>>, vector<8x8x16xf32>
    %314 = vector.shape_cast %313 : vector<8x8x16xf32> to vector<64x16xf32>
    %c0_92 = arith.constant 0 : index
    %c0_93 = arith.constant 0 : index
    %315 = vector.load %arg8[%c0_92, %c0_93] : memref<128x128xf32, #tpu.memory_space<vmem>>, vector<128x128xf32>
    %cst_94 = arith.constant dense<0.000000e+00> : vector<64x128xf32>
    %316 = tpu.matmul %312, %315, %cst_94 {dimension_numbers = #tpu.dot_dimension_numbers<[1], [0], [0], [1], [0, 0, 1, 1], [], []>} : vector<64x128xf32>, vector<128x128xf32>, vector<64x128xf32> -> vector<64x128xf32>
    %c0_95 = arith.constant 0 : index
    %c0_96 = arith.constant 0 : index
    %317 = vector.load %arg9[%c0_95, %c0_96] : memref<16x128xf32, #tpu.memory_space<vmem>>, vector<16x128xf32>
    %cst_97 = arith.constant dense<0.000000e+00> : vector<64x128xf32>
    %318 = tpu.matmul %314, %317, %cst_97 {dimension_numbers = #tpu.dot_dimension_numbers<[1], [0], [0], [1], [0, 0, 1, 1], [], []>} : vector<64x16xf32>, vector<16x128xf32>, vector<64x128xf32> -> vector<64x128xf32>
    %319 = arith.addf %316, %318 : vector<64x128xf32>
    %c3 = arith.constant 3 : index
    %c0_98 = arith.constant 0 : index
    %320 = vector.load %arg11[%c3, %c0_98] : memref<8x384xf32, #tpu.memory_space<vmem>>, vector<1x128xf32>
    %321 = vector.broadcast %320 : vector<1x128xf32> to vector<64x128xf32>
    %322 = arith.addf %319, %321 : vector<64x128xf32>
    %cst_99 = arith.constant 0.000000e+00 : f32
    %323 = vector.broadcast %cst_99 : f32 to vector<64x128xf32>
    %324 = arith.maximumf %322, %323 : vector<64x128xf32>
    %c0_100 = arith.constant 0 : index
    %c0_101 = arith.constant 0 : index
    %325 = vector.load %arg10[%c0_100, %c0_101] : memref<128x128xf32, #tpu.memory_space<vmem>>, vector<128x128xf32>
    %cst_102 = arith.constant dense<0.000000e+00> : vector<64x128xf32>
    %326 = tpu.matmul %324, %325, %cst_102 {dimension_numbers = #tpu.dot_dimension_numbers<[1], [0], [0], [1], [0, 0, 1, 1], [], []>} : vector<64x128xf32>, vector<128x128xf32>, vector<64x128xf32> -> vector<64x128xf32>
    %c4 = arith.constant 4 : index
    %c0_103 = arith.constant 0 : index
    %327 = vector.load %arg11[%c4, %c0_103] : memref<8x384xf32, #tpu.memory_space<vmem>>, vector<1x128xf32>
    %328 = vector.broadcast %327 : vector<1x128xf32> to vector<64x128xf32>
    %329 = arith.addf %326, %328 : vector<64x128xf32>
    %330 = vector.shape_cast %329 : vector<64x128xf32> to vector<8x8x128xf32>
    %c0_104 = arith.constant 0 : index
    %c0_105 = arith.constant 0 : index
    %c0_106 = arith.constant 0 : index
    %331 = vector.load %arg12[%c0_104, %c0_105, %c0_106] : memref<8x8x128xf32, #tpu.memory_space<vmem>>, vector<8x8x128xf32>
    tpu.vector_store %arg12[%c0_104, %c0_105, %c0_106], %330 {strides = array<i32>} : memref<8x8x128xf32, #tpu.memory_space<vmem>>, vector<8x8x128xf32>,
    return
  }
  func.func @transform_0(%arg0: i32, %arg1: i32) -> (i32, i32, i32) {
    %c0_i32 = arith.constant 0 : i32
    %c0_i32_0 = arith.constant 0 : i32
    return %arg1, %arg0, %c0_i32 : i32, i32, i32
  }
  func.func @transform_1(%arg0: i32, %arg1: i32) -> (i32, i32, i32) {
    %c0_i32 = arith.constant 0 : i32
    %c0_i32_0 = arith.constant 0 : i32
    return %arg1, %arg0, %c0_i32 : i32, i32, i32
  }
  func.func @transform_2(%arg0: i32, %arg1: i32) -> (i32, i32) {
    %c0_i32 = arith.constant 0 : i32
    %c0_i32_0 = arith.constant 0 : i32
    return %arg0, %c0_i32 : i32, i32
  }
  func.func @transform_3(%arg0: i32, %arg1: i32) -> (i32, i32) {
    %c0_i32 = arith.constant 0 : i32
    %c0_i32_0 = arith.constant 0 : i32
    %c0_i32_1 = arith.constant 0 : i32
    return %c0_i32, %c0_i32_0 : i32, i32
  }
  func.func @transform_4(%arg0: i32, %arg1: i32) -> (i32, i32) {
    %c0_i32 = arith.constant 0 : i32
    %c0_i32_0 = arith.constant 0 : i32
    %c0_i32_1 = arith.constant 0 : i32
    return %c0_i32, %c0_i32_0 : i32, i32
  }
  func.func @transform_5(%arg0: i32, %arg1: i32) -> (i32, i32) {
    %c0_i32 = arith.constant 0 : i32
    %c0_i32_0 = arith.constant 0 : i32
    %c0_i32_1 = arith.constant 0 : i32
    return %c0_i32, %c0_i32_0 : i32, i32
  }
  func.func @transform_6(%arg0: i32, %arg1: i32) -> (i32, i32) {
    %c0_i32 = arith.constant 0 : i32
    %c0_i32_0 = arith.constant 0 : i32
    %c0_i32_1 = arith.constant 0 : i32
    return %c0_i32, %c0_i32_0 : i32, i32
  }
  func.func @transform_7(%arg0: i32, %arg1: i32) -> (i32, i32) {
    %c0_i32 = arith.constant 0 : i32
    %c0_i32_0 = arith.constant 0 : i32
    %c0_i32_1 = arith.constant 0 : i32
    return %c0_i32, %c0_i32_0 : i32, i32
  }
  func.func @transform_8(%arg0: i32, %arg1: i32) -> (i32, i32) {
    %c0_i32 = arith.constant 0 : i32
    %c0_i32_0 = arith.constant 0 : i32
    %c0_i32_1 = arith.constant 0 : i32
    return %c0_i32, %c0_i32_0 : i32, i32
  }
  func.func @transform_9(%arg0: i32, %arg1: i32) -> (i32, i32) {
    %c0_i32 = arith.constant 0 : i32
    %c0_i32_0 = arith.constant 0 : i32
    %c0_i32_1 = arith.constant 0 : i32
    return %c0_i32, %c0_i32_0 : i32, i32
  }
  func.func @transform_10(%arg0: i32, %arg1: i32) -> (i32, i32, i32) {
    %c0_i32 = arith.constant 0 : i32
    %c0_i32_0 = arith.constant 0 : i32
    return %arg1, %arg0, %c0_i32 : i32, i32, i32
  }
  func.func @transform_11(%arg0: i32, %arg1: i32) -> (i32, i32, i32) {
    %c0_i32 = arith.constant 0 : i32
    %c0_i32_0 = arith.constant 0 : i32
    return %arg1, %arg0, %c0_i32 : i32, i32, i32
  }
}

</mosaic_0001>

<bundles_post_ra>
// kernel: conditional_rnn_agent_forward_seq.1
= control target key start
LH: loop header
LB: loop body
LE: loop exit
PB: predicated region body
PF: predicated region fallthrough
CT: control target
= control target key end

     0   :  { %17 = vsyncpa [#allocation5], 0  ;;  %vm60_vm0 = vcmask 392192   ;;  %s4845_s0 = inlined_call_operand.vmem [shape: f32[8,8,48], index: 0, kind: input, shape index: {}]   ;;  %s4846_s1 = inlined_call_operand.vmem [shape: f32[8,8,16], index: 1, kind: input, shape index: {}]   ;;  %s4847_s2 = inlined_call_operand.vmem [shape: f32[8,128], index: 2, kind: input, shape index: {}]   ;;  %s4848_s3 = inlined_call_operand.vmem [shape: f32[48,128], index: 3, kind: input, shape index: {}]   ;;  %s4849_s4 = inlined_call_operand.vmem [shape: f32[128,384], index: 4, kind: input, shape index: {}]   ;;  %s4850_s5 = inlined_call_operand.vmem [shape: f32[128,384], index: 5, kind: input, shape index: {}]   ;;  %s4851_s6 = inlined_call_operand.vmem [shape: f32[128,128], index: 6, kind: input, shape index: {}]   ;;  %s4852_s7 = inlined_call_operand.vmem [shape: f32[16,128], index: 7, kind: input, shape index: {}]   ;;  %s4853_s8 = inlined_call_operand.vmem [shape: f32[128,128], index: 8, kind: input, shape index: {}]   ;;  %s4854_s9 = inlined_call_operand.vmem [shape: f32[8,384], index: 9, kind: input, shape index: {}]   ;;  %s4855_s10 = inlined_call_operand.hbm [shape: f32[8,8,128], index: 10, kind: output, shape index: {0}]   ;;  %s4856_s11 = inlined_call_operand.hbm [shape: f32[8,8,128], index: 11, kind: output, shape index: {1}]  }
   0x1   :  { %v58_v0 = vld [vmem:[%s4848_s3 + $0x28] sm:$0xff]  ;;  %v57_v1 = vld [vmem:[%s4848_s3 + $0x20] sm:$0xff]  ;;  %v56_v2 = vld [vmem:[%s4848_s3 + $0x18] sm:$0xff] }
   0x2   :  { %2620 = vmatprep.subr.mxu0 %v58_v0  ;;  %v45_v3 = vld [vmem:[%s4845_s0] sm:$0xff]  ;;  %v55_v4 = vld [vmem:[%s4848_s3 + $0x10] sm:$0xff]  ;;  %v243_v6 = vld [vmem:[%s4849_s4 + $0x168] sm:$0xff] }
   0x3   :  { %2621 = vmatpush3.msra.mxu0 %v58_v0  ;;  %2632 = vmatprep.mubr.msk.f32.mxu0 %vm60_vm0, %v45_v3  ;;  %v244_v5 = vld [vmem:[%s4849_s4 + $0x170] sm:$0xff]  ;;  %v241_v7 = vld [vmem:[%s4849_s4 + $0x158] sm:$0xff]  ;;  %v54_v8 = vld [vmem:[%s4848_s3 + $0x8] sm:$0xff] }
   0x4   :  { %2622 = vmatprep.subr.mxu0 %v57_v1  ;;  %264 = vmatprep.subr.mxu1 %v244_v5  ;;  %v240_v9 = vld [vmem:[%s4849_s4 + $0x150] sm:$0xff]  ;;  %v238_v10 = vld [vmem:[%s4849_s4 + $0x140] sm:$0xff]  ;;  %v237_v11 = vld [vmem:[%s4849_s4 + $0x138] sm:$0xff] }
   0x5   :  { %2623 = vmatpush3.msra.mxu0 %v57_v1  ;;  %265 = vmatpush1.msra.mxu1 %v243_v6  ;;  %v53_v12 = vld [vmem:[%s4848_s3] sm:$0xff]  ;;  %v235_v13 = vld [vmem:[%s4849_s4 + $0x128] sm:$0xff]  ;;  %v245_v16 = vld [vmem:[%s4849_s4 + $0x178] sm:$0xff] }
   0x6   :  { %2624 = vmatprep.subr.mxu0 %v56_v2  ;;  %266 = vmatprep.subr.mxu1 %v241_v7  ;;  %v234_v14 = vld [vmem:[%s4849_s4 + $0x120] sm:$0xff]  ;;  %v46_v15 = vld [vmem:[%s4845_s0 + $0x8] sm:$0xff]  ;;  %v47_v17 = vld [vmem:[%s4845_s0 + $0x10] sm:$0xff] }
   0x7   :  { %2625 = vmatpush3.msra.mxu0 %v56_v2  ;;  %267 = vmatpush1.msra.mxu1 %v240_v9  ;;  %v242_v18 = vld [vmem:[%s4849_s4 + $0x160] sm:$0xff]  ;;  %v232_v19 = vld [vmem:[%s4849_s4 + $0x110] sm:$0xff]  ;;  %v231_v20 = vld [vmem:[%s4849_s4 + $0x108] sm:$0xff] }
   0x8   :  { %2626 = vmatprep.subr.mxu0 %v55_v4  ;;  %268 = vmatprep.subr.mxu1 %v238_v10  ;;  %v48_v21 = vld [vmem:[%s4845_s0 + $0x18] sm:$0xff]  ;;  %v239_v22 = vld [vmem:[%s4849_s4 + $0x148] sm:$0xff]  ;;  %v49_v23 = vld [vmem:[%s4845_s0 + $0x20] sm:$0xff] }
   0x9   :  { %2627 = vmatpush3.msra.mxu0 %v55_v4  ;;  %269 = vmatpush1.msra.mxu1 %v237_v11  ;;  %v236_v24 = vld [vmem:[%s4849_s4 + $0x130] sm:$0xff]  ;;  %v229_v25 = vld [vmem:[%s4849_s4 + $0xf8] sm:$0xff] }
   0xa   :  { %2628 = vmatprep.subr.mxu0 %v54_v8  ;;  %270 = vmatprep.subr.mxu1 %v235_v13  ;;  %v228_v26 = vld [vmem:[%s4849_s4 + $0xf0] sm:$0xff] }
   0xb   :  { %2629 = vmatpush3.msra.mxu0 %v54_v8  ;;  %271 = vmatpush1.msra.mxu1 %v234_v14 }
   0xc   :  { %2630 = vmatprep.subr.mxu0 %v53_v12  ;;  %272 = vmatprep.subr.mxu1 %v232_v19 }
   0xd   :  { %2631 = vmatpush3.msra.mxu0 %v53_v12  ;;  %273 = vmatpush1.msra.mxu1 %v231_v20 }
   0xe   :  { %2633 = vmatmul.mubr.msk.f32.vlgmr.msra.gmra.mxu0 %vm60_vm0, %v46_v15  ;;  %2644 = vmatprep.subr.mxu0 %v245_v16 }
   0xf   :  { %2635 = vmatprep.mubr.msk.f32.mxu0 %vm60_vm0, %v47_v17  ;;  %2645 = vmatpush3.msra.mxu0 %v245_v16 }
  0x10   :  { %2646 = vmatprep.subr.mxu0 %v242_v18 }
  0x11   :  { %2647 = vmatpush3.msra.mxu0 %v242_v18 }
  0x12   :  { %2636 = vmatmul.mubr.msk.f32.gmra.mxu0 %vm60_vm0, %v48_v21  ;;  %2648 = vmatprep.subr.mxu0 %v239_v22 }
  0x13   :  { %18 = vsyncpa [#allocation7], 0  ;;  %2638 = vmatprep.mubr.msk.f32.mxu0 %vm60_vm0, %v49_v23  ;;  %v50_v27 = vld [vmem:[%s4845_s0 + $0x28] sm:$0xff]  ;;  %2649 = vmatpush3.msra.mxu0 %v239_v22  ;;  %v233_v28 = vld [vmem:[%s4849_s4 + $0x118] sm:$0xff]  ;;  %v4857_v62 = vmov 0.0   ;;  %vm3252_vm1 = vmmov 0  }
  0x14   :  { %v51_v29 = vld [vmem:[%s4845_s0 + $0x30] sm:$0xff]  ;;  %2650 = vmatprep.subr.mxu0 %v236_v24  ;;  %274 = vmatprep.subr.mxu1 %v229_v25  ;;  %v226_v30 = vld [vmem:[%s4849_s4 + $0xe0] sm:$0xff]  ;;  %v225_v32 = vld [vmem:[%s4849_s4 + $0xd8] sm:$0xff]  ;;  %vm1941_vm2 = vcmask 130048  }
  0x15   :  { %2651 = vmatpush3.msra.mxu0 %v236_v24  ;;  %275 = vmatpush1.msra.mxu1 %v228_v26  ;;  %v230_v31 = vld [vmem:[%s4849_s4 + $0x100] sm:$0xff]  ;;  %v52_v33 = vld [vmem:[%s4845_s0 + $0x38] sm:$0xff]  ;;  %v223_v34 = vld [vmem:[%s4849_s4 + $0xc8] sm:$0xff] }
  0x16   :  { %2639 = vmatmul.mubr.msk.f32.gmra.mxu0 %vm60_vm0, %v50_v27  ;;  %2652 = vmatprep.subr.mxu0 %v233_v28  ;;  %v227_v35 = vld [vmem:[%s4849_s4 + $0xe8] sm:$0xff]  ;;  %v222_v36 = vld [vmem:[%s4849_s4 + $0xc0] sm:$0xff]  ;;  %v220_v37 = vld [vmem:[%s4849_s4 + $0xb0] sm:$0xff] }
  0x17   :  { %2641 = vmatprep.mubr.msk.f32.mxu0 %vm60_vm0, %v51_v29  ;;  %2653 = vmatpush3.msra.mxu0 %v233_v28  ;;  %v224_v38 = vld [vmem:[%s4849_s4 + $0xd0] sm:$0xff]  ;;  %v219_v39 = vld [vmem:[%s4849_s4 + $0xa8] sm:$0xff]  ;;  %v217_v40 = vld [vmem:[%s4849_s4 + $0x98] sm:$0xff] }
  0x18   :  { %276 = vmatprep.subr.mxu1 %v226_v30  ;;  %2654 = vmatprep.subr.mxu0 %v230_v31  ;;  %v221_v41 = vld [vmem:[%s4849_s4 + $0xb8] sm:$0xff]  ;;  %v216_v42 = vld [vmem:[%s4849_s4 + $0x90] sm:$0xff]  ;;  %v214_v43 = vld [vmem:[%s4849_s4 + $0x80] sm:$0xff] }
  0x19   :  { %277 = vmatpush1.msra.mxu1 %v225_v32  ;;  %2655 = vmatpush3.msra.mxu0 %v230_v31  ;;  %v218_v44 = vld [vmem:[%s4849_s4 + $0xa0] sm:$0xff]  ;;  %v213_v45 = vld [vmem:[%s4849_s4 + $0x78] sm:$0xff]  ;;  %v211_v46 = vld [vmem:[%s4849_s4 + $0x68] sm:$0xff] }
  0x1a   :  { %2642 = vmatmul.mubr.msk.f32.gmra.mxu0 %vm60_vm0, %v52_v33  ;;  %278 = vmatprep.subr.mxu1 %v223_v34  ;;  %v215_v47 = vld [vmem:[%s4849_s4 + $0x88] sm:$0xff]  ;;  %v210_v48 = vld [vmem:[%s4849_s4 + $0x60] sm:$0xff]  ;;  %v208_v49 = vld [vmem:[%s4849_s4 + $0x50] sm:$0xff] }
  0x1b   :  { %2656 = vmatprep.subr.mxu0 %v227_v35  ;;  %279 = vmatpush1.msra.mxu1 %v222_v36  ;;  %v212_v50 = vld [vmem:[%s4849_s4 + $0x70] sm:$0xff]  ;;  %v207_v51 = vld [vmem:[%s4849_s4 + $0x48] sm:$0xff]  ;;  %v209_v52 = vld [vmem:[%s4849_s4 + $0x58] sm:$0xff] }
  0x1c   :  { %2657 = vmatpush3.msra.mxu0 %v227_v35  ;;  %280 = vmatprep.subr.mxu1 %v220_v37  ;;  %v205_v53 = vld [vmem:[%s4849_s4 + $0x38] sm:$0xff]  ;;  %v204_v54 = vld [vmem:[%s4849_s4 + $0x30] sm:$0xff]  ;;  %v206_v55 = vld [vmem:[%s4849_s4 + $0x40] sm:$0xff] }
  0x1d   :  { %2658 = vmatprep.subr.mxu0 %v224_v38  ;;  %281 = vmatpush1.msra.mxu1 %v219_v39  ;;  %v202_v56 = vld [vmem:[%s4849_s4 + $0x20] sm:$0xff]  ;;  %v201_v57 = vld [vmem:[%s4849_s4 + $0x18] sm:$0xff]  ;;  %v203_v58 = vld [vmem:[%s4849_s4 + $0x28] sm:$0xff] }
  0x1e   :  { %2659 = vmatpush3.msra.mxu0 %v224_v38  ;;  %282 = vmatprep.subr.mxu1 %v217_v40  ;;  %v199_v59 = vld [vmem:[%s4849_s4 + $0x8] sm:$0xff]  ;;  %v198_v60 = vld [vmem:[%s4849_s4] sm:$0xff]  ;;  %v200_v61 = vld [vmem:[%s4849_s4 + $0x10] sm:$0xff] }
  0x1f   :  { %2660 = vmatprep.subr.mxu0 %v221_v41  ;;  %283 = vmatpush1.msra.mxu1 %v216_v42  ;;  %v3515_v63 = vld [vmem:[%s4850_s5 + $0x170] sm:$0xff]  ;;  %v59_v0 = vld [vmem:[%s4854_s9] ss:$0 sm:$0xff]  ;;  %v3525_v8 = vld [vmem:[%s4850_s5 + $0x168] sm:$0xff] }
  0x20   :  { %2661 = vmatpush3.msra.mxu0 %v221_v41  ;;  %284 = vmatprep.subr.mxu1 %v214_v43  ;;  %4879 = vst [vmem:[#allocation10_spill] sm:$0xff] %v3515_v63  ;;  %v3530_v11 = vld [vmem:[%s4850_s5 + $0x158] sm:$0xff]  ;;  %v3535_v13 = vld [vmem:[%s4850_s5 + $0x150] sm:$0xff]  ;;  %v3546_v15 = vld [vmem:[%s4850_s5 + $0x140] sm:$0xff] }
  0x21   :  { %2662 = vmatprep.subr.mxu0 %v218_v44  ;;  %285 = vmatpush1.msra.mxu1 %v213_v45  ;;  %v3540_v14 = vld [vmem:[%s4850_s5 + $0x178] sm:$0xff]  ;;  %v3561_v21 = vld [vmem:[%s4850_s5 + $0x128] sm:$0xff]  ;;  %v3568_v24 = vld [vmem:[%s4850_s5 + $0x120] sm:$0xff] }
  0x22   :  { %2663 = vmatpush3.msra.mxu0 %v218_v44  ;;  %286 = vmatprep.subr.mxu1 %v211_v46  ;;  %v3553_v19 = vld [vmem:[%s4850_s5 + $0x138] sm:$0xff]  ;;  %v3574_v25 = vld [vmem:[%s4850_s5 + $0x110] sm:$0xff]  ;;  %v3580_v28 = vld [vmem:[%s4850_s5 + $0x108] sm:$0xff] }
  0x23   :  { %2664 = vmatprep.subr.mxu0 %v215_v47  ;;  %287 = vmatpush1.msra.mxu1 %v210_v48  ;;  %v3588_v30 = vld [vmem:[%s4850_s5 + $0xf8] sm:$0xff]  ;;  %v3596_v33 = vld [vmem:[%s4850_s5 + $0xf0] sm:$0xff]  ;;  %v3603_v35 = vld [vmem:[%s4850_s5 + $0xe0] sm:$0xff] }
  0x24   :  { %2665 = vmatpush3.msra.mxu0 %v215_v47  ;;  %288 = vmatprep.subr.mxu1 %v208_v49  ;;  %v3609_v36 = vld [vmem:[%s4850_s5 + $0xd8] sm:$0xff]  ;;  %v3616_v39 = vld [vmem:[%s4850_s5 + $0xc8] sm:$0xff]  ;;  %v3622_v40 = vld [vmem:[%s4850_s5 + $0xc0] sm:$0xff] }
  0x25   :  { %2666 = vmatprep.subr.mxu0 %v212_v50  ;;  %289 = vmatpush1.msra.mxu1 %v207_v51  ;;  %v3629_v41 = vld [vmem:[%s4850_s5 + $0xb0] sm:$0xff]  ;;  %v3635_v42 = vld [vmem:[%s4850_s5 + $0xa8] sm:$0xff]  ;;  %v3641_v43 = vld [vmem:[%s4850_s5 + $0x98] sm:$0xff] }
  0x26   :  { %2667 = vmatpush3.msra.mxu0 %v212_v50  ;;  %290 = vmatprep.subr.mxu1 %v205_v53  ;;  %v3647_v44 = vld [vmem:[%s4850_s5 + $0x90] sm:$0xff]  ;;  %v3652_v45 = vld [vmem:[%s4850_s5 + $0x160] sm:$0xff]  ;;  %v3665_v47 = vld [vmem:[%s4850_s5 + $0x78] sm:$0xff] }
  0x27   :  { %2668 = vmatprep.subr.mxu0 %v209_v52  ;;  %291 = vmatpush1.msra.mxu1 %v204_v54  ;;  %v3659_v46 = vld [vmem:[%s4850_s5 + $0x80] sm:$0xff]  ;;  %v3672_v48 = vld [vmem:[%s4850_s5 + $0x68] sm:$0xff]  ;;  %v3691_v51 = vld [vmem:[%s4850_s5 + $0x50] sm:$0xff] }
  0x28   :  { %2669 = vmatpush3.msra.mxu0 %v209_v52  ;;  %292 = vmatprep.subr.mxu1 %v202_v56  ;;  %v3679_v49 = vld [vmem:[%s4850_s5 + $0x60] sm:$0xff]  ;;  %v3684_v50 = vld [vmem:[%s4850_s5 + $0x148] sm:$0xff]  ;;  %v3704_v53 = vld [vmem:[%s4850_s5 + $0x38] sm:$0xff] }
  0x29   :  { %2670 = vmatprep.subr.mxu0 %v206_v55  ;;  %293 = vmatpush1.msra.mxu1 %v201_v57  ;;  %v3697_v52 = vld [vmem:[%s4850_s5 + $0x48] sm:$0xff]  ;;  %v3711_v54 = vld [vmem:[%s4850_s5 + $0x30] sm:$0xff]  ;;  %v3723_v56 = vld [vmem:[%s4850_s5 + $0x20] sm:$0xff] }
  0x2a   :  { %2671 = vmatpush3.msra.mxu0 %v206_v55  ;;  %294 = vmatprep.subr.mxu1 %v199_v59  ;;  %v3716_v55 = vld [vmem:[%s4850_s5 + $0x130] sm:$0xff]  ;;  %4880 = vst [vmem:[#allocation11_spill] sm:$0xff] %v3723_v56  ;;  %v3729_v57 = vld [vmem:[%s4850_s5 + $0x18] sm:$0xff]  ;;  %v3743_v59 = vld [vmem:[%s4850_s5] sm:$0xff] }
  0x2b   :  { %2672 = vmatprep.subr.mxu0 %v203_v58  ;;  %295 = vmatpush1.msra.mxu1 %v198_v60  ;;  %4881 = vst [vmem:[#allocation12_spill] sm:$0xff] %v3729_v57  ;;  %4883 = vst [vmem:[#allocation14_spill] sm:$0xff] %v3743_v59  ;;  %v3748_v60 = vld [vmem:[%s4850_s5 + $0x118] sm:$0xff] }
  0x2c   :  { %2673 = vmatpush3.msra.mxu0 %v203_v58  ;;  %328 = vmatprep.mubr.f32.mxu1 %v4857_v62  ;;  %v3736_v58 = vld [vmem:[%s4850_s5 + $0x8] sm:$0xff] }
  0x2d   :  { %2674 = vmatprep.subr.mxu0 %v200_v61  ;;  %559 = vmatprep.subr.mxu1 %v3515_v63  ;;  %4882 = vst [vmem:[#allocation13_spill] sm:$0xff] %v3736_v58 }
  0x2e   :  { %2675 = vmatpush3.msra.mxu0 %v200_v61  ;;  %v3755_v61 = vld [vmem:[%s4847_s2] sm:$0xff] }
  0x2f   :  { %2688 = vmatprep.subr.mxu0 %v4857_v62 }
  0xce   :  { %v2634_v1 = vpop.f32.mrf.mxu0 }
  0xcf   :  { %v157_v2 = vadd.f32 %v2634_v1, %v59_v0  ;;  %v3771_v1 = vld [vmem:[%s4850_s5 + $0xe8] sm:$0xff] }
  0xd0   :  { %v151_v3 = vpop.f32.mrf.mxu0 }
  0xd1   :  { %v152_v4 = vadd.f32 %v151_v3, %v59_v0  ;;  %v191_v9 = vmax.f32 %v157_v2, 0.0  ;;  %v3780_v2 = vld [vmem:[%s4850_s5 + $0xd0] sm:$0xff]  ;;  %v3789_v3 = vld [vmem:[%s4850_s5 + $0xb8] sm:$0xff] }
  0xd2   :  { %v2637_v5 = vpop.f32.mrf.mxu0 }
  0xd3   :  { %v190_v6 = vmax.f32 %v152_v4, 0.0  ;;  %v167_v7 = vadd.f32 %v2637_v5, %v59_v0  ;;  %v3798_v4 = vld [vmem:[%s4850_s5 + $0xa0] sm:$0xff]  ;;  %v3807_v5 = vld [vmem:[%s4850_s5 + $0x88] sm:$0xff] }
  0xd4   :  { %v161_v10 = vpop.f32.mrf.mxu0 }
  0xd5   :  { %v162_v12 = vadd.f32 %v161_v10, %v59_v0  ;;  %329 = vmatmul.mubr.f32.vlgmr.msra.gmra.mxu1 %v190_v6  ;;  %2676 = vmatprep.mubr.f32.mxu0 %v190_v6  ;;  %v193_v17 = vmax.f32 %v167_v7, 0.0  ;;  %v3816_v6 = vld [vmem:[%s4850_s5 + $0x70] sm:$0xff]  ;;  %v3825_v7 = vld [vmem:[%s4850_s5 + $0x58] sm:$0xff]  ;;  %v3843_v10 = vld [vmem:[%s4850_s5 + $0x28] sm:$0xff] }
  0xd6   :  { %560 = vmatpush1.msra.mxu1 %v3525_v8  ;;  %2677 = vmatmul.mubr.f32.vlgmr.msra.gmra.mxu0 %v191_v9  ;;  %v2640_v16 = vpop.f32.mrf.mxu0  ;;  %4884 = vst [vmem:[#allocation15_spill] sm:$0xff] %v3843_v10 }
  0xd7   :  { %v192_v18 = vmax.f32 %v162_v12, 0.0  ;;  %561 = vmatprep.subr.mxu1 %v3530_v11  ;;  %334 = vmatprep.mubr.f32.mxu1 %v4857_v62  ;;  %v3556_v20 = vadd.f32 %v2640_v16, %v59_v0  ;;  %v3852_v12 = vld [vmem:[%s4850_s5 + $0x10] sm:$0xff]  ;;  %v249_v16 = vlaneseq }
  0xd8   :  { %562 = vmatpush1.msra.mxu1 %v3535_v13  ;;  %v171_v22 = vpop.f32.mrf.mxu0  ;;  %2689 = vmatpush3.msra.mxu0 %v3540_v14  ;;  %4885 = vst [vmem:[#allocation16_spill] sm:$0xff] %v3852_v12 }
  0xd9   :  { %563 = vmatprep.subr.mxu1 %v3546_v15  ;;  %335 = vmatmul.mubr.f32.gmra.mxu1 %v191_v9  ;;  %v172_v23 = vadd.f32 %v171_v22, %v59_v0  ;;  %v195_v29 = vmax.f32 %v3556_v20, 0.0  ;;  %v3834_v9 = vld [vmem:[%s4850_s5 + $0x40] sm:$0xff] }
  0xda   :  { %2679 = vmatprep.mubr.f32.mxu0 %v192_v18  ;;  %564 = vmatpush1.msra.mxu1 %v3553_v19  ;;  %v2643_v26 = vpop.f32.mrf.mxu0  ;;  %v2363_v20 = vld [vmem:[%s4854_s9 + $0x1] ss:$8 sm:$0x7] }
  0xdb   :  { %2680 = vmatmul.mubr.f32.gmra.mxu0 %v193_v17  ;;  %565 = vmatprep.subr.mxu1 %v3561_v21  ;;  %v194_v27 = vmax.f32 %v172_v23, 0.0  ;;  %v3590_v31 = vadd.f32 %v2643_v26, %v59_v0 }
  0xdc   :  { %566 = vmatpush1.msra.mxu1 %v3568_v24  ;;  %340 = vmatprep.mubr.f32.mxu1 %v4857_v62  ;;  %v181_v32 = vpop.f32.mrf.mxu0 }
  0xdd   :  { %567 = vmatprep.subr.mxu1 %v3574_v25  ;;  %341 = vmatmul.mubr.f32.gmra.mxu1 %v192_v18  ;;  %v182_v34 = vadd.f32 %v181_v32, %v59_v0  ;;  %v197_v38 = vmax.f32 %v3590_v31, 0.0  ;;  %v3762_v0 = vld [vmem:[%s4850_s5 + $0x100] sm:$0xff] }
  0xde   :  { %568 = vmatpush1.msra.mxu1 %v3580_v28  ;;  %346 = vmatprep.mubr.f32.mxu1 %v4857_v62 }
  0xdf   :  { %569 = vmatprep.subr.mxu1 %v3588_v30  ;;  %2682 = vmatprep.mubr.f32.mxu0 %v194_v27  ;;  %v196_v37 = vmax.f32 %v182_v34, 0.0 }
  0xe0   :  { %570 = vmatpush1.msra.mxu1 %v3596_v33  ;;  %2683 = vmatmul.mubr.f32.gmra.mxu0 %v195_v29 }
  0xe1   :  { %571 = vmatprep.subr.mxu1 %v3603_v35  ;;  %347 = vmatmul.mubr.f32.gmra.mxu1 %v193_v17  ;;  %v250_v17 = vshrl.u32 %v249_v16, 7 }
  0xe2   :  { %572 = vmatpush1.msra.mxu1 %v3609_v36  ;;  %352 = vmatprep.mubr.f32.mxu1 %v4857_v62 }
  0xe3   :  { %573 = vmatprep.subr.mxu1 %v3616_v39  ;;  %2685 = vmatprep.mubr.f32.mxu0 %v196_v37  ;;  %v259_v18 = vsub.s32 2, %v250_v17  ;;  %v251_v23 = vsub.s32 0, %v250_v17 }
  0xe4   :  { %574 = vmatpush1.msra.mxu1 %v3622_v40  ;;  %2686 = vmatmul.mubr.f32.gmra.mxu0 %v197_v38 }
  0xe5   :  { %575 = vmatprep.subr.mxu1 %v3629_v41  ;;  %353 = vmatmul.mubr.f32.gmra.mxu1 %v194_v27  ;;  %v3914_v22 = vrot.slane %v2363_v20, %v259_v18  ;;  %v252_v34 = vrot.slane %v2363_v20, %v251_v23 }
  0xe6   :  { %576 = vmatpush1.msra.mxu1 %v3635_v42  ;;  %358 = vmatprep.mubr.f32.mxu1 %v4857_v62 }
  0xe7   :  { %577 = vmatprep.subr.mxu1 %v3641_v43  ;;  %2690 = vmatprep.subr.mxu0 %v4857_v62 }
  0xe8   :  { %578 = vmatpush1.msra.mxu1 %v3647_v44  ;;  %2691 = vmatpush3.msra.mxu0 %v3652_v45 }
  0xe9   :  { %579 = vmatprep.subr.mxu1 %v3659_v46  ;;  %359 = vmatmul.mubr.f32.gmra.mxu1 %v195_v29  ;;  %v255_v29 = vsub.s32 1, %v250_v17 }
  0xea   :  { %580 = vmatpush1.msra.mxu1 %v3665_v47  ;;  %364 = vmatprep.mubr.f32.mxu1 %v4857_v62 }
  0xeb   :  { %581 = vmatprep.subr.mxu1 %v3672_v48  ;;  %2692 = vmatprep.subr.mxu0 %v4857_v62 }
  0xec   :  { %582 = vmatpush1.msra.mxu1 %v3679_v49  ;;  %2693 = vmatpush3.msra.mxu0 %v3684_v50 }
  0xed   :  { %583 = vmatprep.subr.mxu1 %v3691_v51  ;;  %365 = vmatmul.mubr.f32.gmra.mxu1 %v196_v37 }
  0xee   :  { %584 = vmatpush1.msra.mxu1 %v3697_v52  ;;  %370 = vmatprep.mubr.f32.mxu1 %v4857_v62 }
  0xef   :  { %585 = vmatprep.subr.mxu1 %v3704_v53  ;;  %2694 = vmatprep.subr.mxu0 %v4857_v62 }
  0xf0   :  { %586 = vmatpush1.msra.mxu1 %v3711_v54  ;;  %2695 = vmatpush3.msra.mxu0 %v3716_v55 }
  0xf1   :  { %587 = vmatprep.subr.mxu1 %v3723_v56  ;;  %371 = vmatmul.mubr.f32.gmra.mxu1 %v197_v38 }
  0xf2   :  { %588 = vmatpush1.msra.mxu1 %v3729_v57  ;;  %623 = vmatprep.mubr.f32.mxu1 %v4857_v62 }
  0xf3   :  { %589 = vmatprep.subr.mxu1 %v3736_v58  ;;  %2696 = vmatprep.subr.mxu0 %v4857_v62 }
  0xf4   :  { %590 = vmatpush1.msra.mxu1 %v3743_v59  ;;  %2697 = vmatpush3.msra.mxu0 %v3748_v60 }
  0xf5   :  { %624 = vmatmul.mubr.f32.vlgmr.msra.gmra.mxu1 %v3755_v61  ;;  %2698 = vmatprep.subr.mxu0 %v4857_v62 }
  0xf6   :  { %2699 = vmatpush3.msra.mxu0 %v3762_v0  ;;  %2720 = vmatprep.mubr.msk.f32.mxu0 %vm3252_vm1, %v4857_v62 }
  0xf7   :  { %2700 = vmatprep.subr.mxu0 %v4857_v62  ;;  %727 = vmatprep.subr.mxu1 %v3515_v63 }
  0xf8   :  { %2701 = vmatpush3.msra.mxu0 %v3771_v1  ;;  %728 = vmatpush1.msra.mxu1 %v3525_v8 }
  0xf9   :  { %2702 = vmatprep.subr.mxu0 %v4857_v62  ;;  %729 = vmatprep.subr.mxu1 %v3530_v11 }
  0xfa   :  { %2703 = vmatpush3.msra.mxu0 %v3780_v2  ;;  %730 = vmatpush1.msra.mxu1 %v3535_v13 }
  0xfb   :  { %2704 = vmatprep.subr.mxu0 %v4857_v62  ;;  %731 = vmatprep.subr.mxu1 %v3546_v15 }
  0xfc   :  { %2705 = vmatpush3.msra.mxu0 %v3789_v3  ;;  %732 = vmatpush1.msra.mxu1 %v3553_v19 }
  0xfd   :  { %2706 = vmatprep.subr.mxu0 %v4857_v62  ;;  %733 = vmatprep.subr.mxu1 %v3561_v21 }
  0xfe   :  { %2707 = vmatpush3.msra.mxu0 %v3798_v4  ;;  %734 = vmatpush1.msra.mxu1 %v3568_v24 }
  0xff   :  { %2708 = vmatprep.subr.mxu0 %v4857_v62  ;;  %735 = vmatprep.subr.mxu1 %v3574_v25 }
 0x100   :  { %2709 = vmatpush3.msra.mxu0 %v3807_v5  ;;  %736 = vmatpush1.msra.mxu1 %v3580_v28 }
 0x101   :  { %2710 = vmatprep.subr.mxu0 %v4857_v62  ;;  %737 = vmatprep.subr.mxu1 %v3588_v30 }
 0x102   :  { %2711 = vmatpush3.msra.mxu0 %v3816_v6  ;;  %738 = vmatpush1.msra.mxu1 %v3596_v33 }
 0x103   :  { %2712 = vmatprep.subr.mxu0 %v4857_v62  ;;  %739 = vmatprep.subr.mxu1 %v3603_v35 }
 0x104   :  { %2713 = vmatpush3.msra.mxu0 %v3825_v7  ;;  %740 = vmatpush1.msra.mxu1 %v3609_v36 }
 0x105   :  { %2714 = vmatprep.subr.mxu0 %v4857_v62  ;;  %741 = vmatprep.subr.mxu1 %v3616_v39 }
 0x106   :  { %2715 = vmatpush3.msra.mxu0 %v3834_v9  ;;  %742 = vmatpush1.msra.mxu1 %v3622_v40 }
 0x107   :  { %2716 = vmatprep.subr.mxu0 %v4857_v62  ;;  %743 = vmatprep.subr.mxu1 %v3629_v41 }
 0x108   :  { %2717 = vmatpush3.msra.mxu0 %v3843_v10  ;;  %744 = vmatpush1.msra.mxu1 %v3635_v42 }
 0x109   :  { %2718 = vmatprep.subr.mxu0 %v4857_v62  ;;  %745 = vmatprep.subr.mxu1 %v3641_v43 }
 0x10a   :  { %2719 = vmatpush3.msra.mxu0 %v3852_v12  ;;  %746 = vmatpush1.msra.mxu1 %v3647_v44 }
 0x10b   :  { %2721 = vmatmul.mubr.f32.vlgmr.msra.gmra.mxu0 %v3755_v61  ;;  %2723 = vmatprep.subr.mxu0 %v4857_v62 }
 0x10c   :  { %2724 = vmatpush3.msra.mxu0 %v3540_v14  ;;  %747 = vmatprep.subr.mxu1 %v3659_v46 }
 0x10d   :  { %2725 = vmatprep.subr.mxu0 %v4857_v62  ;;  %748 = vmatpush1.msra.mxu1 %v3665_v47 }
 0x10e   :  { %2726 = vmatpush3.msra.mxu0 %v3652_v45  ;;  %749 = vmatprep.subr.mxu1 %v3672_v48 }
 0x10f   :  { %2727 = vmatprep.subr.mxu0 %v4857_v62  ;;  %750 = vmatpush1.msra.mxu1 %v3679_v49 }
 0x110   :  { %2728 = vmatpush3.msra.mxu0 %v3684_v50  ;;  %751 = vmatprep.subr.mxu1 %v3691_v51 }
 0x111   :  { %2729 = vmatprep.subr.mxu0 %v4857_v62  ;;  %752 = vmatpush1.msra.mxu1 %v3697_v52 }
 0x112   :  { %2730 = vmatpush3.msra.mxu0 %v3716_v55  ;;  %753 = vmatprep.subr.mxu1 %v3704_v53 }
 0x113   :  { %2731 = vmatprep.subr.mxu0 %v4857_v62  ;;  %754 = vmatpush1.msra.mxu1 %v3711_v54 }
 0x114   :  { %2732 = vmatpush3.msra.mxu0 %v3748_v60  ;;  %755 = vmatprep.subr.mxu1 %v3723_v56 }
 0x115   :  { %2733 = vmatprep.subr.mxu0 %v4857_v62  ;;  %756 = vmatpush1.msra.mxu1 %v3729_v57 }
 0x116   :  { %2734 = vmatpush3.msra.mxu0 %v3762_v0  ;;  %757 = vmatprep.subr.mxu1 %v3736_v58 }
 0x117   :  { %2735 = vmatprep.subr.mxu0 %v4857_v62  ;;  %758 = vmatpush1.msra.mxu1 %v3743_v59 }
 0x118   :  { %2736 = vmatpush3.msra.mxu0 %v3771_v1  ;;  %791 = vmatprep.mubr.f32.mxu1 %v4857_v62 }
 0x119   :  { %2737 = vmatprep.subr.mxu0 %v4857_v62  ;;  %2755 = vmatprep.mubr.msk.f32.mxu0 %vm3252_vm1, %v4857_v62 }
 0x11a   :  { %2738 = vmatpush3.msra.mxu0 %v3780_v2  ;;  %896 = vmatprep.subr.mxu1 %v3515_v63 }
 0x11b   :  { %2739 = vmatprep.subr.mxu0 %v4857_v62 }
 0x11c   :  { %2740 = vmatpush3.msra.mxu0 %v3789_v3 }
 0x11d   :  { %2741 = vmatprep.subr.mxu0 %v4857_v62 }
 0x11e   :  { %2742 = vmatpush3.msra.mxu0 %v3798_v4 }
 0x11f   :  { %2743 = vmatprep.subr.mxu0 %v4857_v62 }
 0x120   :  { %2744 = vmatpush3.msra.mxu0 %v3807_v5 }
 0x121   :  { %2745 = vmatprep.subr.mxu0 %v4857_v62 }
 0x122   :  { %2746 = vmatpush3.msra.mxu0 %v3816_v6 }
 0x123   :  { %2747 = vmatprep.subr.mxu0 %v4857_v62 }
 0x124   :  { %2748 = vmatpush3.msra.mxu0 %v3825_v7 }
 0x125   :  { %2749 = vmatprep.subr.mxu0 %v4857_v62 }
 0x126   :  { %2750 = vmatpush3.msra.mxu0 %v3834_v9 }
 0x127   :  { %2751 = vmatprep.subr.mxu0 %v4857_v62 }
 0x128   :  { %2752 = vmatpush3.msra.mxu0 %v3843_v10 }
 0x129   :  { %2753 = vmatprep.subr.mxu0 %v4857_v62 }
 0x12a   :  { %2754 = vmatpush3.msra.mxu0 %v3852_v12 }
 0x12b   :  { %2758 = vmatprep.subr.mxu0 %v4857_v62  ;;  %v256_v62 = vrot.slane %v2363_v20, %v255_v29 }
 0x195   :  { %v330_v26 = vpop.f32.mrf.mxu1 }
 0x196   :  { %v2678_v27 = vpop.f32.mrf.mxu0 }
 0x197   :  { %v3917_v31 = vadd.f32 %v2678_v27, %v3914_v22  ;;  %v332_v32 = vpop.f32.mrf.mxu1 }
 0x198   :  { %v443_v37 = vpop.f32.mrf.mxu0  ;;  %v333_v56 = vadd.f32 %v332_v32, %v256_v62 }
 0x199   :  { %4886 = vst [vmem:[#allocation17_spill] sm:$0xff] %v3917_v31  ;;  %v336_v38 = vpop.f32.mrf.mxu1 }
 0x19a   :  { %v3919_v16 = vadd.f32 %v336_v38, %v252_v34 }
 0x19b   :  { %v2681_v63 = vpop.f32.mrf.mxu0  ;;  %v338_v12 = vpop.f32.mrf.mxu1 }
 0x19c   :  { %4887 = vst [vmem:[#allocation18_spill] sm:$0xff] %v3919_v16  ;;  %v3922_v59 = vadd.f32 %v2681_v63, %v3914_v22  ;;  %v3924_v18 = vadd.f32 %v338_v12, %v256_v62 }
 0x19d   :  { %v453_v58 = vpop.f32.mrf.mxu0  ;;  %v342_v10 = vpop.f32.mrf.mxu1 }
 0x19e   :  { %4888 = vst [vmem:[#allocation19_spill] sm:$0xff] %v3922_v59  ;;  %4889 = vst [vmem:[#allocation20_spill] sm:$0xff] %v3924_v18  ;;  %v3927_v17 = vadd.f32 %v453_v58, %v3914_v22  ;;  %v3929_v27 = vadd.f32 %v342_v10, %v252_v34 }
 0x19f   :  { %v344_v23 = vpop.f32.mrf.mxu1 }
 0x1a0   :  { %4890 = vst [vmem:[#allocation21_spill] sm:$0xff] %v3927_v17  ;;  %4891 = vst [vmem:[#allocation22_spill] sm:$0xff] %v3929_v27  ;;  %v3931_v31 = vadd.f32 %v344_v23, %v256_v62  ;;  %v2684_v20 = vpop.f32.mrf.mxu0 }
 0x1a1   :  { %v348_v29 = vpop.f32.mrf.mxu1  ;;  %v3934_v38 = vadd.f32 %v2684_v20, %v3914_v22 }
 0x1a2   :  { %4892 = vst [vmem:[#allocation23_spill] sm:$0xff] %v3931_v31  ;;  %v3936_v16 = vadd.f32 %v348_v29, %v252_v34  ;;  %v463_v63 = vpop.f32.mrf.mxu0 }
 0x1a3   :  { %4893 = vst [vmem:[#allocation24_spill] sm:$0xff] %v3934_v38  ;;  %v350_v12 = vpop.f32.mrf.mxu1  ;;  %v3939_v59 = vadd.f32 %v463_v63, %v3914_v22 }
 0x1a4   :  { %4894 = vst [vmem:[#allocation25_spill] sm:$0xff] %v3936_v16  ;;  %v3941_v18 = vadd.f32 %v350_v12, %v256_v62  ;;  %v2687_v58 = vpop.f32.mrf.mxu0 }
 0x1a5   :  { %4895 = vst [vmem:[#allocation26_spill] sm:$0xff] %v3939_v59  ;;  %v354_v10 = vpop.f32.mrf.mxu1  ;;  %v3944_v17 = vadd.f32 %v2687_v58, %v3914_v22 }
 0x1a6   :  { %4896 = vst [vmem:[#allocation27_spill] sm:$0xff] %v3941_v18  ;;  %v3946_v23 = vadd.f32 %v354_v10, %v252_v34  ;;  %v473_v31 = vpop.f32.mrf.mxu0 }
 0x1a7   :  { %4897 = vst [vmem:[#allocation28_spill] sm:$0xff] %v3944_v17  ;;  %v356_v27 = vpop.f32.mrf.mxu1  ;;  %v3949_v20 = vadd.f32 %v473_v31, %v3914_v22  ;;  %v331_v31 = vadd.f32 %v330_v26, %v252_v34 }
 0x1a8   :  { %4898 = vst [vmem:[#allocation29_spill] sm:$0xff] %v3946_v23  ;;  %v3951_v29 = vadd.f32 %v356_v27, %v256_v62 }
 0x1a9   :  { %4899 = vst [vmem:[#allocation30_spill] sm:$0xff] %v3949_v20  ;;  %v360_v38 = vpop.f32.mrf.mxu1 }
 0x1aa   :  { %4900 = vst [vmem:[#allocation31_spill] sm:$0xff] %v3951_v29  ;;  %v3953_v16 = vadd.f32 %v360_v38, %v252_v34 }
 0x1ab   :  { %v362_v63 = vpop.f32.mrf.mxu1 }
 0x1ac   :  { %4901 = vst [vmem:[#allocation32_spill] sm:$0xff] %v3953_v16  ;;  %v3955_v12 = vadd.f32 %v362_v63, %v256_v62 }
 0x1ad   :  { %v366_v59 = vpop.f32.mrf.mxu1 }
 0x1ae   :  { %4902 = vst [vmem:[#allocation33_spill] sm:$0xff] %v3955_v12  ;;  %v3957_v18 = vadd.f32 %v366_v59, %v252_v34 }
 0x1af   :  { %v368_v58 = vpop.f32.mrf.mxu1 }
 0x1b0   :  { %4903 = vst [vmem:[#allocation34_spill] sm:$0xff] %v3957_v18  ;;  %v3959_v17 = vadd.f32 %v368_v58, %v256_v62 }
 0x1b1   :  { %v372_v10 = vpop.f32.mrf.mxu1 }
 0x1b2   :  { %4904 = vst [vmem:[#allocation35_spill] sm:$0xff] %v3959_v17  ;;  %v3961_v23 = vadd.f32 %v372_v10, %v252_v34 }
 0x1b3   :  { %v374_v57 = vpop.f32.mrf.mxu1 }
 0x1b4   :  { %4905 = vst [vmem:[#allocation36_spill] sm:$0xff] %v3961_v23  ;;  %v3963_v20 = vadd.f32 %v374_v57, %v256_v62  ;;  %v3968_v57 = vld [vmem:[%s4854_s9 + $0x12] ss:$0 sm:$0xff]  ;;  %v444_v62 = vadd.f32 %v443_v37, %v3914_v22  ;;  %v4907_v22 = vmov 0.0  }
 0x1b5   :  { %v625_v27 = vpop.f32.mrf.mxu1  ;;  %v4909_v37 = vld [vmem:[#allocation12_spill] sm:$0xff] }
 0x1b6   :  { %4906 = vst [vmem:[#allocation37_spill] sm:$0xff] %v3963_v20  ;;  %v700_v29 = vadd.f32 %v625_v27, %v331_v31 }
 0x1b7   :  { %v627_v16 = vpop.f32.mrf.mxu1 }
 0x1b8   :  { %v2364_v38 = vmul.f32 -1.442695, %v700_v29  ;;  %v707_v63 = vadd.f32 %v627_v16, %v333_v56 }
 0x1ba   :  { %3078 = vpow2.f32 %v2364_v38  ;;  %v2365_v12 = vmul.f32 -1.442695, %v707_v63  ;;  %v4910_v38 = vld [vmem:[#allocation15_spill] sm:$0xff]  ;;  %v4911_v63 = vld [vmem:[#allocation13_spill] sm:$0xff] }
 0x1bc   :  { %3080 = vpow2.f32 %v2365_v12 }
 0x1c7   :  { %v3079_v59 = vpop.eup %3078 }
 0x1c8   :  { %v704_v18 = vadd.f32 1.0, %v3079_v59  ;;  %v4912_v59 = vld [vmem:[#allocation14_spill] sm:$0xff] }
 0x1c9   :  { %v3081_v10 = vpop.eup %3080 }
 0x1ca   :  { %3082 = vrcp.f32 %v704_v18  ;;  %v711_v26 = vadd.f32 1.0, %v3081_v10  ;;  %v4914_v10 = vld [vmem:[#allocation10_spill] sm:$0xff] }
 0x1cb   :  { %v696_v58 = vpop.f32.mrf.mxu0 }
 0x1cc   :  { %v714_v34 = vadd.f32 %v696_v58, %v3968_v57  ;;  %3084 = vrcp.f32 %v711_v26  ;;  %v4913_v58 = vld [vmem:[#allocation16_spill] sm:$0xff] }
 0x1cd   :  { %v2722_v17 = vpop.f32.mrf.mxu0 }
 0x1d7   :  { %v3083_v29 = vpop.eup %3082 }
 0x1d8   :  { %v715_v56 = vmul.f32 %v3083_v29, %v714_v34  ;;  %v4915_v29 = vld [vmem:[#allocation18_spill] sm:$0xff] }
 0x1d9   :  { %v3085_v16 = vpop.eup %3084 }
 0x1da   :  { %v716_v32 = vadd.f32 %v715_v56, %v444_v62  ;;  %v718_v18 = vsub.f32 1.0, %v3085_v16  ;;  %v720_v31 = vmul.f32 %v3085_v16, %v3755_v61  ;;  %v4908_v61 = vld [vmem:[#allocation11_spill] sm:$0xff] }
 0x1dc   :  { %3086 = vtanh.f32 %v716_v32 }
 0x1e9   :  { %v3087_v12 = vpop.eup %3086 }
 0x1ea   :  { %v719_v17 = vmul.f32 %v3087_v12, %v718_v18  ;;  %v4916_v18 = vld [vmem:[#allocation20_spill] sm:$0xff] }
 0x1ec   :  { %v3973_v27 = vadd.f32 %v720_v31, %v719_v17 }
 0x1ee   :  { %722 = vst [vmem:[#allocation6] sm:$0xff] %v3973_v27  ;;  %792 = vmatmul.mubr.f32.vlgmr.msra.gmra.mxu1 %v3973_v27  ;;  %2756 = vmatmul.mubr.f32.vlgmr.msra.gmra.mxu0 %v3973_v27 }
 0x1ef   :  { %897 = vmatpush1.msra.mxu1 %v3525_v8  ;;  %2759 = vmatpush3.msra.mxu0 %v3540_v14 }
 0x1f0   :  { %898 = vmatprep.subr.mxu1 %v3530_v11  ;;  %2760 = vmatprep.subr.mxu0 %v4907_v22 }
 0x1f1   :  { %899 = vmatpush1.msra.mxu1 %v3535_v13  ;;  %2761 = vmatpush3.msra.mxu0 %v3652_v45 }
 0x1f2   :  { %900 = vmatprep.subr.mxu1 %v3546_v15  ;;  %2762 = vmatprep.subr.mxu0 %v4907_v22 }
 0x1f3   :  { %901 = vmatpush1.msra.mxu1 %v3553_v19  ;;  %2763 = vmatpush3.msra.mxu0 %v3684_v50 }
 0x1f4   :  { %902 = vmatprep.subr.mxu1 %v3561_v21  ;;  %2764 = vmatprep.subr.mxu0 %v4907_v22 }
 0x1f5   :  { %903 = vmatpush1.msra.mxu1 %v3568_v24  ;;  %2765 = vmatpush3.msra.mxu0 %v3716_v55 }
 0x1f6   :  { %904 = vmatprep.subr.mxu1 %v3574_v25  ;;  %2766 = vmatprep.subr.mxu0 %v4907_v22 }
 0x1f7   :  { %905 = vmatpush1.msra.mxu1 %v3580_v28  ;;  %2767 = vmatpush3.msra.mxu0 %v3748_v60 }
 0x1f8   :  { %906 = vmatprep.subr.mxu1 %v3588_v30  ;;  %2768 = vmatprep.subr.mxu0 %v4907_v22 }
 0x1f9   :  { %907 = vmatpush1.msra.mxu1 %v3596_v33  ;;  %2769 = vmatpush3.msra.mxu0 %v3762_v0 }
 0x1fa   :  { %908 = vmatprep.subr.mxu1 %v3603_v35  ;;  %2770 = vmatprep.subr.mxu0 %v4907_v22 }
 0x1fb   :  { %909 = vmatpush1.msra.mxu1 %v3609_v36  ;;  %2771 = vmatpush3.msra.mxu0 %v3771_v1 }
 0x1fc   :  { %910 = vmatprep.subr.mxu1 %v3616_v39  ;;  %2772 = vmatprep.subr.mxu0 %v4907_v22 }
 0x1fd   :  { %911 = vmatpush1.msra.mxu1 %v3622_v40  ;;  %2773 = vmatpush3.msra.mxu0 %v3780_v2 }
 0x1fe   :  { %912 = vmatprep.subr.mxu1 %v3629_v41  ;;  %2774 = vmatprep.subr.mxu0 %v4907_v22 }
 0x1ff   :  { %913 = vmatpush1.msra.mxu1 %v3635_v42  ;;  %2775 = vmatpush3.msra.mxu0 %v3789_v3 }
 0x200   :  { %914 = vmatprep.subr.mxu1 %v3641_v43  ;;  %2776 = vmatprep.subr.mxu0 %v4907_v22 }
 0x201   :  { %915 = vmatpush1.msra.mxu1 %v3647_v44  ;;  %2777 = vmatpush3.msra.mxu0 %v3798_v4 }
 0x202   :  { %916 = vmatprep.subr.mxu1 %v3659_v46  ;;  %2778 = vmatprep.subr.mxu0 %v4907_v22 }
 0x203   :  { %917 = vmatpush1.msra.mxu1 %v3665_v47  ;;  %2779 = vmatpush3.msra.mxu0 %v3807_v5 }
 0x204   :  { %918 = vmatprep.subr.mxu1 %v3672_v48  ;;  %2780 = vmatprep.subr.mxu0 %v4907_v22 }
 0x205   :  { %919 = vmatpush1.msra.mxu1 %v3679_v49  ;;  %2781 = vmatpush3.msra.mxu0 %v3816_v6 }
 0x206   :  { %920 = vmatprep.subr.mxu1 %v3691_v51  ;;  %2782 = vmatprep.subr.mxu0 %v4907_v22 }
 0x207   :  { %921 = vmatpush1.msra.mxu1 %v3697_v52  ;;  %2783 = vmatpush3.msra.mxu0 %v3825_v7 }
 0x208   :  { %922 = vmatprep.subr.mxu1 %v3704_v53  ;;  %2784 = vmatprep.subr.mxu0 %v4907_v22 }
 0x209   :  { %923 = vmatpush1.msra.mxu1 %v3711_v54  ;;  %2785 = vmatpush3.msra.mxu0 %v3834_v9 }
 0x20a   :  { %924 = vmatprep.subr.mxu1 %v4908_v61  ;;  %2786 = vmatprep.subr.mxu0 %v4907_v22 }
 0x20b   :  { %925 = vmatpush1.msra.mxu1 %v4909_v37  ;;  %2787 = vmatpush3.msra.mxu0 %v4910_v38  ;;  %v4917_v38 = vld [vmem:[#allocation17_spill] sm:$0xff] }
 0x20c   :  { %926 = vmatprep.subr.mxu1 %v4911_v63  ;;  %2788 = vmatprep.subr.mxu0 %v4907_v22 }
 0x20d   :  { %927 = vmatpush1.msra.mxu1 %v4912_v59  ;;  %960 = vmatprep.mubr.f32.mxu1 %v4907_v22 }
 0x20e   :  { %2789 = vmatpush3.msra.mxu0 %v4913_v58  ;;  %2790 = vmatprep.mubr.msk.f32.mxu0 %vm3252_vm1, %v4907_v22 }
 0x20f   :  { %1065 = vmatprep.subr.mxu1 %v4914_v10  ;;  %2793 = vmatprep.subr.mxu0 %v4907_v22 }
 0x2ae   :  { %v793_v26 = vpop.f32.mrf.mxu1  ;;  %v864_v34 = vpop.f32.mrf.mxu0 }
 0x2af   :  { %v868_v62 = vadd.f32 %v793_v26, %v4915_v29  ;;  %v882_v10 = vadd.f32 %v864_v34, %v3968_v57 }
 0x2b0   :  { %v2757_v56 = vpop.f32.mrf.mxu0  ;;  %v795_v16 = vpop.f32.mrf.mxu1 }
 0x2b1   :  { %v2366_v32 = vmul.f32 -1.442695, %v868_v62  ;;  %v875_v12 = vadd.f32 %v795_v16, %v4916_v18 }
 0x2b3   :  { %3088 = vpow2.f32 %v2366_v32  ;;  %v2367_v17 = vmul.f32 -1.442695, %v875_v12 }
 0x2b5   :  { %3090 = vpow2.f32 %v2367_v17 }
 0x2c0   :  { %v3089_v31 = vpop.eup %3088 }
 0x2c1   :  { %v872_v20 = vadd.f32 1.0, %v3089_v31 }
 0x2c2   :  { %v3091_v23 = vpop.eup %3090 }
 0x2c3   :  { %3092 = vrcp.f32 %v872_v20  ;;  %v879_v58 = vadd.f32 1.0, %v3091_v23  ;;  %v4918_v23 = vld [vmem:[#allocation15_spill] sm:$0xff]  ;;  %v4919_v20 = vld [vmem:[#allocation13_spill] sm:$0xff] }
 0x2c5   :  { %3094 = vrcp.f32 %v879_v58 }
 0x2d0   :  { %v3093_v59 = vpop.eup %3092 }
 0x2d1   :  { %v883_v63 = vmul.f32 %v3093_v59, %v882_v10  ;;  %v4923_v10 = vld [vmem:[#allocation22_spill] sm:$0xff] }
 0x2d2   :  { %v3095_v29 = vpop.eup %3094 }
 0x2d3   :  { %v884_v26 = vadd.f32 %v883_v63, %v4917_v38  ;;  %v886_v62 = vsub.f32 1.0, %v3095_v29  ;;  %v888_v16 = vmul.f32 %v3095_v29, %v3973_v27  ;;  %v4920_v27 = vld [vmem:[#allocation14_spill] sm:$0xff]  ;;  %v4921_v38 = vld [vmem:[#allocation16_spill] sm:$0xff] }
 0x2d4   :  { %v4922_v63 = vld [vmem:[#allocation10_spill] sm:$0xff] }
 0x2d5   :  { %3096 = vtanh.f32 %v884_v26  ;;  %v4924_v26 = vld [vmem:[#allocation23_spill] sm:$0xff] }
 0x2e2   :  { %v3097_v56 = vpop.eup %3096 }
 0x2e3   :  { %v887_v32 = vmul.f32 %v3097_v56, %v886_v62 }
 0x2e5   :  { %v4050_v18 = vadd.f32 %v888_v16, %v887_v32 }
 0x2e7   :  { %891 = vst [vmem:[#allocation6 + $0x8] sm:$0xff] %v4050_v18  ;;  %961 = vmatmul.mubr.f32.vlgmr.msra.gmra.mxu1 %v4050_v18  ;;  %2791 = vmatmul.mubr.f32.vlgmr.msra.gmra.mxu0 %v4050_v18 }
 0x2e8   :  { %1066 = vmatpush1.msra.mxu1 %v3525_v8  ;;  %2794 = vmatpush3.msra.mxu0 %v3540_v14 }
 0x2e9   :  { %1067 = vmatprep.subr.mxu1 %v3530_v11  ;;  %2795 = vmatprep.subr.mxu0 %v4907_v22 }
 0x2ea   :  { %1068 = vmatpush1.msra.mxu1 %v3535_v13  ;;  %2796 = vmatpush3.msra.mxu0 %v3652_v45 }
 0x2eb   :  { %1069 = vmatprep.subr.mxu1 %v3546_v15  ;;  %2797 = vmatprep.subr.mxu0 %v4907_v22 }
 0x2ec   :  { %1070 = vmatpush1.msra.mxu1 %v3553_v19  ;;  %2798 = vmatpush3.msra.mxu0 %v3684_v50 }
 0x2ed   :  { %1071 = vmatprep.subr.mxu1 %v3561_v21  ;;  %2799 = vmatprep.subr.mxu0 %v4907_v22 }
 0x2ee   :  { %1072 = vmatpush1.msra.mxu1 %v3568_v24  ;;  %2800 = vmatpush3.msra.mxu0 %v3716_v55 }
 0x2ef   :  { %1073 = vmatprep.subr.mxu1 %v3574_v25  ;;  %2801 = vmatprep.subr.mxu0 %v4907_v22 }
 0x2f0   :  { %1074 = vmatpush1.msra.mxu1 %v3580_v28  ;;  %2802 = vmatpush3.msra.mxu0 %v3748_v60 }
 0x2f1   :  { %1075 = vmatprep.subr.mxu1 %v3588_v30  ;;  %2803 = vmatprep.subr.mxu0 %v4907_v22 }
 0x2f2   :  { %1076 = vmatpush1.msra.mxu1 %v3596_v33  ;;  %2804 = vmatpush3.msra.mxu0 %v3762_v0 }
 0x2f3   :  { %1077 = vmatprep.subr.mxu1 %v3603_v35  ;;  %2805 = vmatprep.subr.mxu0 %v4907_v22 }
 0x2f4   :  { %1078 = vmatpush1.msra.mxu1 %v3609_v36  ;;  %2806 = vmatpush3.msra.mxu0 %v3771_v1 }
 0x2f5   :  { %1079 = vmatprep.subr.mxu1 %v3616_v39  ;;  %2807 = vmatprep.subr.mxu0 %v4907_v22 }
 0x2f6   :  { %1080 = vmatpush1.msra.mxu1 %v3622_v40  ;;  %2808 = vmatpush3.msra.mxu0 %v3780_v2 }
 0x2f7   :  { %1081 = vmatprep.subr.mxu1 %v3629_v41  ;;  %2809 = vmatprep.subr.mxu0 %v4907_v22 }
 0x2f8   :  { %1082 = vmatpush1.msra.mxu1 %v3635_v42  ;;  %2810 = vmatpush3.msra.mxu0 %v3789_v3 }
 0x2f9   :  { %1083 = vmatprep.subr.mxu1 %v3641_v43  ;;  %2811 = vmatprep.subr.mxu0 %v4907_v22 }
 0x2fa   :  { %1084 = vmatpush1.msra.mxu1 %v3647_v44  ;;  %2812 = vmatpush3.msra.mxu0 %v3798_v4 }
 0x2fb   :  { %1085 = vmatprep.subr.mxu1 %v3659_v46  ;;  %2813 = vmatprep.subr.mxu0 %v4907_v22 }
 0x2fc   :  { %1086 = vmatpush1.msra.mxu1 %v3665_v47  ;;  %2814 = vmatpush3.msra.mxu0 %v3807_v5 }
 0x2fd   :  { %1087 = vmatprep.subr.mxu1 %v3672_v48  ;;  %2815 = vmatprep.subr.mxu0 %v4907_v22 }
 0x2fe   :  { %1088 = vmatpush1.msra.mxu1 %v3679_v49  ;;  %2816 = vmatpush3.msra.mxu0 %v3816_v6 }
 0x2ff   :  { %1089 = vmatprep.subr.mxu1 %v3691_v51  ;;  %2817 = vmatprep.subr.mxu0 %v4907_v22 }
 0x300   :  { %1090 = vmatpush1.msra.mxu1 %v3697_v52  ;;  %2818 = vmatpush3.msra.mxu0 %v3825_v7 }
 0x301   :  { %1091 = vmatprep.subr.mxu1 %v3704_v53  ;;  %2819 = vmatprep.subr.mxu0 %v4907_v22 }
 0x302   :  { %1092 = vmatpush1.msra.mxu1 %v3711_v54  ;;  %2820 = vmatpush3.msra.mxu0 %v3834_v9 }
 0x303   :  { %1093 = vmatprep.subr.mxu1 %v4908_v61  ;;  %2821 = vmatprep.subr.mxu0 %v4907_v22 }
 0x304   :  { %1094 = vmatpush1.msra.mxu1 %v4909_v37  ;;  %2822 = vmatpush3.msra.mxu0 %v4918_v23  ;;  %v4925_v23 = vld [vmem:[#allocation21_spill] sm:$0xff] }
 0x305   :  { %1095 = vmatprep.subr.mxu1 %v4919_v20  ;;  %2823 = vmatprep.subr.mxu0 %v4907_v22 }
 0x306   :  { %1096 = vmatpush1.msra.mxu1 %v4920_v27  ;;  %1129 = vmatprep.mubr.f32.mxu1 %v4907_v22 }
 0x307   :  { %2824 = vmatpush3.msra.mxu0 %v4921_v38  ;;  %2825 = vmatprep.mubr.msk.f32.mxu0 %vm3252_vm1, %v4907_v22 }
 0x308   :  { %1234 = vmatprep.subr.mxu1 %v4922_v63  ;;  %2828 = vmatprep.subr.mxu0 %v4907_v22 }
 0x3a7   :  { %v962_v59 = vpop.f32.mrf.mxu1  ;;  %v1033_v58 = vpop.f32.mrf.mxu0 }
 0x3a8   :  { %v1037_v34 = vadd.f32 %v962_v59, %v4923_v10  ;;  %v1051_v63 = vadd.f32 %v1033_v58, %v3968_v57  ;;  %v4267_v58 = vld [vmem:[%s4850_s5 + $0x128] sm:$0xff] }
 0x3a9   :  { %v2792_v12 = vpop.f32.mrf.mxu0  ;;  %v964_v31 = vpop.f32.mrf.mxu1 }
 0x3aa   :  { %v2368_v17 = vmul.f32 -1.442695, %v1037_v34  ;;  %v1044_v29 = vadd.f32 %v964_v31, %v4924_v26 }
 0x3ac   :  { %3098 = vpow2.f32 %v2368_v17  ;;  %v2369_v62 = vmul.f32 -1.442695, %v1044_v29  ;;  %v4274_v29 = vld [vmem:[%s4850_s5 + $0x120] sm:$0xff] }
 0x3ae   :  { %3100 = vpow2.f32 %v2369_v62  ;;  %v4280_v62 = vld [vmem:[%s4850_s5 + $0x130] sm:$0xff] }
 0x3b9   :  { %v3099_v56 = vpop.eup %3098 }
 0x3ba   :  { %v1041_v32 = vadd.f32 1.0, %v3099_v56  ;;  %v4286_v56 = vld [vmem:[%s4850_s5 + $0x110] sm:$0xff] }
 0x3bb   :  { %v3101_v16 = vpop.eup %3100 }
 0x3bc   :  { %3102 = vrcp.f32 %v1041_v32  ;;  %v1048_v38 = vadd.f32 1.0, %v3101_v16  ;;  %v4293_v32 = vld [vmem:[%s4850_s5 + $0x108] sm:$0xff]  ;;  %v4300_v16 = vld [vmem:[%s4850_s5 + $0xf8] sm:$0xff] }
 0x3be   :  { %3104 = vrcp.f32 %v1048_v38  ;;  %v4261_v38 = vld [vmem:[%s4850_s5 + $0x148] sm:$0xff] }
 0x3c9   :  { %v3103_v27 = vpop.eup %3102 }
 0x3ca   :  { %v1052_v20 = vmul.f32 %v3103_v27, %v1051_v63  ;;  %v4255_v27 = vld [vmem:[%s4850_s5 + $0x138] sm:$0xff]  ;;  %v4307_v63 = vld [vmem:[%s4850_s5 + $0xf0] sm:$0xff] }
 0x3cb   :  { %v3105_v10 = vpop.eup %3104 }
 0x3cc   :  { %v1053_v59 = vadd.f32 %v1052_v20, %v4925_v23  ;;  %v1055_v34 = vsub.f32 1.0, %v3105_v10  ;;  %v1057_v31 = vmul.f32 %v3105_v10, %v4050_v18  ;;  %v4236_v18 = vld [vmem:[%s4850_s5 + $0x150] sm:$0xff]  ;;  %v4242_v23 = vld [vmem:[%s4850_s5 + $0x160] sm:$0xff] }
 0x3cd   :  { %v4248_v20 = vld [vmem:[%s4850_s5 + $0x140] sm:$0xff] }
 0x3ce   :  { %3106 = vtanh.f32 %v1053_v59  ;;  %v4321_v59 = vld [vmem:[%s4850_s5 + $0xd8] sm:$0xff]  ;;  %v4335_v10 = vld [vmem:[%s4850_s5 + $0xc0] sm:$0xff] }
 0x3db   :  { %v3107_v12 = vpop.eup %3106 }
 0x3dc   :  { %v1056_v17 = vmul.f32 %v3107_v12, %v1055_v34  ;;  %v4349_v34 = vld [vmem:[%s4850_s5 + $0xa8] sm:$0xff]  ;;  %v4363_v12 = vld [vmem:[%s4850_s5 + $0x90] sm:$0xff] }
 0x3de   :  { %v4127_v26 = vadd.f32 %v1057_v31, %v1056_v17  ;;  %v4377_v17 = vld [vmem:[%s4850_s5 + $0x78] sm:$0xff]  ;;  %v4391_v31 = vld [vmem:[%s4850_s5 + $0x60] sm:$0xff] }
 0x3e0   :  { %4926 = vst [vmem:[#allocation11_spill] sm:$0xff] %v4127_v26  ;;  %1060 = vst [vmem:[#allocation6 + $0x10] sm:$0xff] %v4127_v26  ;;  %1130 = vmatmul.mubr.f32.vlgmr.msra.gmra.mxu1 %v4127_v26  ;;  %2826 = vmatmul.mubr.f32.vlgmr.msra.gmra.mxu0 %v4127_v26 }
 0x3e1   :  { %1235 = vmatpush1.msra.mxu1 %v3525_v8  ;;  %2829 = vmatpush3.msra.mxu0 %v3540_v14  ;;  %v4927_v8 = vld [vmem:[#allocation15_spill] sm:$0xff]  ;;  %v4930_v14 = vld [vmem:[#allocation16_spill] sm:$0xff] }
 0x3e2   :  { %1236 = vmatprep.subr.mxu1 %v3530_v11  ;;  %2830 = vmatprep.subr.mxu0 %v4907_v22  ;;  %v4928_v11 = vld [vmem:[#allocation13_spill] sm:$0xff] }
 0x3e3   :  { %1237 = vmatpush1.msra.mxu1 %v3535_v13  ;;  %2831 = vmatpush3.msra.mxu0 %v3652_v45  ;;  %v4929_v13 = vld [vmem:[#allocation14_spill] sm:$0xff] }
 0x3e4   :  { %1238 = vmatprep.subr.mxu1 %v3546_v15  ;;  %2832 = vmatprep.subr.mxu0 %v4907_v22  ;;  %v4200_v15 = vld [vmem:[%s4850_s5 + $0x170] sm:$0xff] }
 0x3e5   :  { %1239 = vmatpush1.msra.mxu1 %v3553_v19  ;;  %2833 = vmatpush3.msra.mxu0 %v3684_v50 }
 0x3e6   :  { %1240 = vmatprep.subr.mxu1 %v3561_v21  ;;  %2834 = vmatprep.subr.mxu0 %v4907_v22 }
 0x3e7   :  { %1241 = vmatpush1.msra.mxu1 %v3568_v24  ;;  %2835 = vmatpush3.msra.mxu0 %v3716_v55  ;;  %v4931_v24 = vld [vmem:[#allocation25_spill] sm:$0xff]  ;;  %v4217_v55 = vld [vmem:[%s4850_s5 + $0x168] sm:$0xff] }
 0x3e8   :  { %1242 = vmatprep.subr.mxu1 %v3574_v25  ;;  %2836 = vmatprep.subr.mxu0 %v4907_v22 }
 0x3e9   :  { %1243 = vmatpush1.msra.mxu1 %v3580_v28  ;;  %2837 = vmatpush3.msra.mxu0 %v3748_v60 }
 0x3ea   :  { %1244 = vmatprep.subr.mxu1 %v3588_v30  ;;  %2838 = vmatprep.subr.mxu0 %v4907_v22 }
 0x3eb   :  { %1245 = vmatpush1.msra.mxu1 %v3596_v33  ;;  %2839 = vmatpush3.msra.mxu0 %v3762_v0 }
 0x3ec   :  { %1246 = vmatprep.subr.mxu1 %v3603_v35  ;;  %2840 = vmatprep.subr.mxu0 %v4907_v22  ;;  %v4932_v35 = vld [vmem:[#allocation27_spill] sm:$0xff] }
 0x3ed   :  { %1247 = vmatpush1.msra.mxu1 %v3609_v36  ;;  %2841 = vmatpush3.msra.mxu0 %v3771_v1 }
 0x3ee   :  { %1248 = vmatprep.subr.mxu1 %v3616_v39  ;;  %2842 = vmatprep.subr.mxu0 %v4907_v22 }
 0x3ef   :  { %1249 = vmatpush1.msra.mxu1 %v3622_v40  ;;  %2843 = vmatpush3.msra.mxu0 %v3780_v2 }
 0x3f0   :  { %1250 = vmatprep.subr.mxu1 %v3629_v41  ;;  %2844 = vmatprep.subr.mxu0 %v4907_v22 }
 0x3f1   :  { %1251 = vmatpush1.msra.mxu1 %v3635_v42  ;;  %2845 = vmatpush3.msra.mxu0 %v3789_v3 }
 0x3f2   :  { %1252 = vmatprep.subr.mxu1 %v3641_v43  ;;  %2846 = vmatprep.subr.mxu0 %v4907_v22 }
 0x3f3   :  { %1253 = vmatpush1.msra.mxu1 %v3647_v44  ;;  %2847 = vmatpush3.msra.mxu0 %v3798_v4 }
 0x3f4   :  { %1254 = vmatprep.subr.mxu1 %v3659_v46  ;;  %2848 = vmatprep.subr.mxu0 %v4907_v22 }
 0x3f5   :  { %1255 = vmatpush1.msra.mxu1 %v3665_v47  ;;  %2849 = vmatpush3.msra.mxu0 %v3807_v5  ;;  %v4933_v47 = vld [vmem:[#allocation19_spill] sm:$0xff] }
 0x3f6   :  { %1256 = vmatprep.subr.mxu1 %v3672_v48  ;;  %2850 = vmatprep.subr.mxu0 %v4907_v22 }
 0x3f7   :  { %1257 = vmatpush1.msra.mxu1 %v3679_v49  ;;  %2851 = vmatpush3.msra.mxu0 %v3816_v6 }
 0x3f8   :  { %1258 = vmatprep.subr.mxu1 %v3691_v51  ;;  %2852 = vmatprep.subr.mxu0 %v4907_v22 }
 0x3f9   :  { %1259 = vmatpush1.msra.mxu1 %v3697_v52  ;;  %2853 = vmatpush3.msra.mxu0 %v3825_v7 }
 0x3fa   :  { %1260 = vmatprep.subr.mxu1 %v3704_v53  ;;  %2854 = vmatprep.subr.mxu0 %v4907_v22 }
 0x3fb   :  { %1261 = vmatpush1.msra.mxu1 %v3711_v54  ;;  %2855 = vmatpush3.msra.mxu0 %v3834_v9 }
 0x3fc   :  { %1262 = vmatprep.subr.mxu1 %v4908_v61  ;;  %2856 = vmatprep.subr.mxu0 %v4907_v22  ;;  %v4223_v61 = vld [vmem:[%s4850_s5 + $0x178] sm:$0xff] }
 0x3fd   :  { %1263 = vmatpush1.msra.mxu1 %v4909_v37  ;;  %2857 = vmatpush3.msra.mxu0 %v4927_v8  ;;  %v4229_v37 = vld [vmem:[%s4850_s5 + $0x158] sm:$0xff] }
 0x3fe   :  { %1264 = vmatprep.subr.mxu1 %v4928_v11  ;;  %2858 = vmatprep.subr.mxu0 %v4907_v22  ;;  %v4405_v11 = vld [vmem:[%s4850_s5 + $0x48] sm:$0xff] }
 0x3ff   :  { %1265 = vmatpush1.msra.mxu1 %v4929_v13  ;;  %1298 = vmatprep.mubr.f32.mxu1 %v4907_v22  ;;  %v4419_v13 = vld [vmem:[%s4850_s5 + $0x30] sm:$0xff] }
 0x400   :  { %2859 = vmatpush3.msra.mxu0 %v4930_v14  ;;  %2860 = vmatprep.mubr.msk.f32.mxu0 %vm3252_vm1, %v4907_v22 }
 0x401   :  { %1403 = vmatprep.subr.mxu1 %v4200_v15  ;;  %2863 = vmatprep.subr.mxu0 %v4907_v22 }
 0x4a0   :  { %v1131_v19 = vpop.f32.mrf.mxu1  ;;  %v1202_v21 = vpop.f32.mrf.mxu0 }
 0x4a1   :  { %v1206_v25 = vadd.f32 %v1131_v19, %v4931_v24  ;;  %v1220_v44 = vadd.f32 %v1202_v21, %v3968_v57  ;;  %v4433_v19 = vld [vmem:[%s4850_s5 + $0x18] sm:$0xff]  ;;  %v4447_v21 = vld [vmem:[%s4850_s5] sm:$0xff] }
 0x4a2   :  { %v2827_v28 = vpop.f32.mrf.mxu0  ;;  %v1133_v33 = vpop.f32.mrf.mxu1  ;;  %4936 = vst [vmem:[#allocation20_spill] sm:$0xff] %v4447_v21 }
 0x4a3   :  { %v2370_v30 = vmul.f32 -1.442695, %v1206_v25  ;;  %v1213_v36 = vadd.f32 %v1133_v33, %v4932_v35  ;;  %v4937_v25 = vld [vmem:[#allocation29_spill] sm:$0xff] }
 0x4a5   :  { %3108 = vpow2.f32 %v2370_v30  ;;  %v2371_v39 = vmul.f32 -1.442695, %v1213_v36  ;;  %v4938_v36 = vld [vmem:[#allocation31_spill] sm:$0xff] }
 0x4a7   :  { %3110 = vpow2.f32 %v2371_v39 }
 0x4b2   :  { %v3109_v40 = vpop.eup %3108 }
 0x4b3   :  { %v1210_v41 = vadd.f32 1.0, %v3109_v40 }
 0x4b4   :  { %v3111_v42 = vpop.eup %3110 }
 0x4b5   :  { %3112 = vrcp.f32 %v1210_v41  ;;  %v1217_v43 = vadd.f32 1.0, %v3111_v42 }
 0x4b7   :  { %3114 = vrcp.f32 %v1217_v43 }
 0x4c2   :  { %v3113_v45 = vpop.eup %3112 }
 0x4c3   :  { %v1221_v46 = vmul.f32 %v3113_v45, %v1220_v44 }
 0x4c4   :  { %v3115_v49 = vpop.eup %3114 }
 0x4c5   :  { %v1222_v48 = vadd.f32 %v1221_v46, %v4933_v47  ;;  %v1224_v50 = vsub.f32 1.0, %v3115_v49  ;;  %v1226_v53 = vmul.f32 %v3115_v49, %v4127_v26  ;;  %v4939_v47 = vld [vmem:[#allocation26_spill] sm:$0xff] }
 0x4c7   :  { %3116 = vtanh.f32 %v1222_v48 }
 0x4d4   :  { %v3117_v51 = vpop.eup %3116 }
 0x4d5   :  { %v1225_v52 = vmul.f32 %v3117_v51, %v1224_v50 }
 0x4d7   :  { %v4209_v54 = vadd.f32 %v1226_v53, %v1225_v52 }
 0x4d9   :  { %4934 = vst [vmem:[#allocation12_spill] sm:$0xff] %v4209_v54  ;;  %1229 = vst [vmem:[#allocation6 + $0x18] sm:$0xff] %v4209_v54  ;;  %1299 = vmatmul.mubr.f32.vlgmr.msra.gmra.mxu1 %v4209_v54  ;;  %2861 = vmatmul.mubr.f32.vlgmr.msra.gmra.mxu0 %v4209_v54 }
 0x4da   :  { %1404 = vmatpush1.msra.mxu1 %v4217_v55  ;;  %2864 = vmatpush3.msra.mxu0 %v4223_v61 }
 0x4db   :  { %1405 = vmatprep.subr.mxu1 %v4229_v37  ;;  %2865 = vmatprep.subr.mxu0 %v4907_v22 }
 0x4dc   :  { %1406 = vmatpush1.msra.mxu1 %v4236_v18  ;;  %2866 = vmatpush3.msra.mxu0 %v4242_v23 }
 0x4dd   :  { %1407 = vmatprep.subr.mxu1 %v4248_v20  ;;  %2867 = vmatprep.subr.mxu0 %v4907_v22 }
 0x4de   :  { %1408 = vmatpush1.msra.mxu1 %v4255_v27  ;;  %2868 = vmatpush3.msra.mxu0 %v4261_v38 }
 0x4df   :  { %1409 = vmatprep.subr.mxu1 %v4267_v58  ;;  %2869 = vmatprep.subr.mxu0 %v4907_v22 }
 0x4e0   :  { %1410 = vmatpush1.msra.mxu1 %v4274_v29  ;;  %2870 = vmatpush3.msra.mxu0 %v4280_v62 }
 0x4e1   :  { %1411 = vmatprep.subr.mxu1 %v4286_v56  ;;  %2871 = vmatprep.subr.mxu0 %v4907_v22 }
 0x4e2   :  { %1412 = vmatpush1.msra.mxu1 %v4293_v32  ;;  %2872 = vmatpush3.msra.mxu0 %v3748_v60  ;;  %v4314_v60 = vld [vmem:[%s4850_s5 + $0xe0] sm:$0xff] }
 0x4e3   :  { %1413 = vmatprep.subr.mxu1 %v4300_v16  ;;  %2873 = vmatprep.subr.mxu0 %v4907_v22 }
 0x4e4   :  { %1414 = vmatpush1.msra.mxu1 %v4307_v63  ;;  %2874 = vmatpush3.msra.mxu0 %v3762_v0  ;;  %v4328_v0 = vld [vmem:[%s4850_s5 + $0xc8] sm:$0xff] }
 0x4e5   :  { %1415 = vmatprep.subr.mxu1 %v4314_v60  ;;  %2875 = vmatprep.subr.mxu0 %v4907_v22 }
 0x4e6   :  { %1416 = vmatpush1.msra.mxu1 %v4321_v59  ;;  %2876 = vmatpush3.msra.mxu0 %v3771_v1  ;;  %v4342_v1 = vld [vmem:[%s4850_s5 + $0xb0] sm:$0xff] }
 0x4e7   :  { %1417 = vmatprep.subr.mxu1 %v4328_v0  ;;  %2877 = vmatprep.subr.mxu0 %v4907_v22 }
 0x4e8   :  { %1418 = vmatpush1.msra.mxu1 %v4335_v10  ;;  %2878 = vmatpush3.msra.mxu0 %v3780_v2  ;;  %v4356_v2 = vld [vmem:[%s4850_s5 + $0x98] sm:$0xff] }
 0x4e9   :  { %1419 = vmatprep.subr.mxu1 %v4342_v1  ;;  %2879 = vmatprep.subr.mxu0 %v4907_v22 }
 0x4ea   :  { %1420 = vmatpush1.msra.mxu1 %v4349_v34  ;;  %2880 = vmatpush3.msra.mxu0 %v3789_v3  ;;  %v4370_v3 = vld [vmem:[%s4850_s5 + $0x80] sm:$0xff] }
 0x4eb   :  { %1421 = vmatprep.subr.mxu1 %v4356_v2  ;;  %2881 = vmatprep.subr.mxu0 %v4907_v22 }
 0x4ec   :  { %1422 = vmatpush1.msra.mxu1 %v4363_v12  ;;  %2882 = vmatpush3.msra.mxu0 %v3798_v4  ;;  %v4384_v4 = vld [vmem:[%s4850_s5 + $0x68] sm:$0xff] }
 0x4ed   :  { %1423 = vmatprep.subr.mxu1 %v4370_v3  ;;  %2883 = vmatprep.subr.mxu0 %v4907_v22 }
 0x4ee   :  { %1424 = vmatpush1.msra.mxu1 %v4377_v17  ;;  %2884 = vmatpush3.msra.mxu0 %v3807_v5  ;;  %v4398_v5 = vld [vmem:[%s4850_s5 + $0x50] sm:$0xff] }
 0x4ef   :  { %1425 = vmatprep.subr.mxu1 %v4384_v4  ;;  %2885 = vmatprep.subr.mxu0 %v4907_v22 }
 0x4f0   :  { %1426 = vmatpush1.msra.mxu1 %v4391_v31  ;;  %2886 = vmatpush3.msra.mxu0 %v3816_v6  ;;  %v4412_v6 = vld [vmem:[%s4850_s5 + $0x38] sm:$0xff] }
 0x4f1   :  { %1427 = vmatprep.subr.mxu1 %v4398_v5  ;;  %2887 = vmatprep.subr.mxu0 %v4907_v22 }
 0x4f2   :  { %1428 = vmatpush1.msra.mxu1 %v4405_v11  ;;  %2888 = vmatpush3.msra.mxu0 %v3825_v7  ;;  %v4426_v7 = vld [vmem:[%s4850_s5 + $0x20] sm:$0xff] }
 0x4f3   :  { %1429 = vmatprep.subr.mxu1 %v4412_v6  ;;  %2889 = vmatprep.subr.mxu0 %v4907_v22 }
 0x4f4   :  { %1430 = vmatpush1.msra.mxu1 %v4419_v13  ;;  %2890 = vmatpush3.msra.mxu0 %v3834_v9  ;;  %v4440_v9 = vld [vmem:[%s4850_s5 + $0x8] sm:$0xff] }
 0x4f5   :  { %1431 = vmatprep.subr.mxu1 %v4426_v7  ;;  %2891 = vmatprep.subr.mxu0 %v4907_v22  ;;  %4935 = vst [vmem:[#allocation18_spill] sm:$0xff] %v4440_v9 }
 0x4f6   :  { %1432 = vmatpush1.msra.mxu1 %v4433_v19  ;;  %2892 = vmatpush3.msra.mxu0 %v4927_v8 }
 0x4f7   :  { %1433 = vmatprep.subr.mxu1 %v4440_v9  ;;  %2893 = vmatprep.subr.mxu0 %v4907_v22 }
 0x4f8   :  { %1434 = vmatpush1.msra.mxu1 %v4447_v21  ;;  %1467 = vmatprep.mubr.f32.mxu1 %v4907_v22 }
 0x4f9   :  { %2894 = vmatpush3.msra.mxu0 %v4930_v14  ;;  %2895 = vmatprep.mubr.msk.f32.mxu0 %vm3252_vm1, %v4907_v22 }
 0x4fa   :  { %1572 = vmatprep.subr.mxu1 %v4200_v15  ;;  %2898 = vmatprep.subr.mxu0 %v4907_v22 }
 0x599   :  { %v1300_v8 = vpop.f32.mrf.mxu1  ;;  %v1371_v24 = vpop.f32.mrf.mxu0 }
 0x59a   :  { %v1375_v28 = vadd.f32 %v1300_v8, %v4937_v25  ;;  %v1389_v44 = vadd.f32 %v1371_v24, %v3968_v57  ;;  %v4486_v24 = vld [vmem:[%s4850_s5 + $0x118] sm:$0xff]  ;;  %v4495_v25 = vld [vmem:[%s4850_s5 + $0x100] sm:$0xff] }
 0x59b   :  { %v2862_v30 = vpop.f32.mrf.mxu0  ;;  %v1302_v35 = vpop.f32.mrf.mxu1 }
 0x59c   :  { %v2372_v33 = vmul.f32 -1.442695, %v1375_v28  ;;  %v1382_v39 = vadd.f32 %v1302_v35, %v4938_v36  ;;  %v4504_v28 = vld [vmem:[%s4850_s5 + $0xe8] sm:$0xff]  ;;  %v4513_v30 = vld [vmem:[%s4850_s5 + $0xd0] sm:$0xff]  ;;  %v4531_v35 = vld [vmem:[%s4850_s5 + $0xa0] sm:$0xff] }
 0x59d   :  { %v4540_v36 = vld [vmem:[%s4850_s5 + $0x88] sm:$0xff] }
 0x59e   :  { %3118 = vpow2.f32 %v2372_v33  ;;  %v2373_v40 = vmul.f32 -1.442695, %v1382_v39  ;;  %v4522_v33 = vld [vmem:[%s4850_s5 + $0xb8] sm:$0xff]  ;;  %v4549_v39 = vld [vmem:[%s4850_s5 + $0x70] sm:$0xff] }
 0x5a0   :  { %3120 = vpow2.f32 %v2373_v40  ;;  %v4558_v40 = vld [vmem:[%s4850_s5 + $0x58] sm:$0xff] }
 0x5ab   :  { %v3119_v14 = vpop.eup %3118 }
 0x5ac   :  { %v1379_v41 = vadd.f32 1.0, %v3119_v14  ;;  %v4567_v14 = vld [vmem:[%s4850_s5 + $0x40] sm:$0xff] }
 0x5ad   :  { %v3121_v42 = vpop.eup %3120 }
 0x5ae   :  { %3122 = vrcp.f32 %v1379_v41  ;;  %v1386_v43 = vadd.f32 1.0, %v3121_v42  ;;  %v4576_v41 = vld [vmem:[%s4850_s5 + $0x28] sm:$0xff]  ;;  %v4586_v42 = vld [vmem:[%s4850_s5 + $0x10] sm:$0xff] }
 0x5af   :  { %4940 = vst [vmem:[#allocation17_spill] sm:$0xff] %v4576_v41  ;;  %4941 = vst [vmem:[#allocation10_spill] sm:$0xff] %v4586_v42 }
 0x5b0   :  { %3124 = vrcp.f32 %v1386_v43 }
 0x5bb   :  { %v3123_v45 = vpop.eup %3122 }
 0x5bc   :  { %v1390_v46 = vmul.f32 %v3123_v45, %v1389_v44  ;;  %v4942_v45 = vld [vmem:[#allocation32_spill] sm:$0xff] }
 0x5bd   :  { %v3125_v49 = vpop.eup %3124 }
 0x5be   :  { %v1391_v48 = vadd.f32 %v1390_v46, %v4939_v47  ;;  %v1393_v50 = vsub.f32 1.0, %v3125_v49  ;;  %v1395_v53 = vmul.f32 %v3125_v49, %v4209_v54 }
 0x5c0   :  { %3126 = vtanh.f32 %v1391_v48 }
 0x5cd   :  { %v3127_v51 = vpop.eup %3126 }
 0x5ce   :  { %v1394_v52 = vmul.f32 %v3127_v51, %v1393_v50  ;;  %v4943_v50 = vld [vmem:[#allocation33_spill] sm:$0xff] }
 0x5d0   :  { %v4461_v8 = vadd.f32 %v1395_v53, %v1394_v52 }
 0x5d2   :  { %1398 = vst [vmem:[#allocation6 + $0x20] sm:$0xff] %v4461_v8  ;;  %1468 = vmatmul.mubr.f32.vlgmr.msra.gmra.mxu1 %v4461_v8  ;;  %2896 = vmatmul.mubr.f32.vlgmr.msra.gmra.mxu0 %v4461_v8 }
 0x5d3   :  { %1573 = vmatpush1.msra.mxu1 %v4217_v55  ;;  %2899 = vmatpush3.msra.mxu0 %v4223_v61 }
 0x5d4   :  { %1574 = vmatprep.subr.mxu1 %v4229_v37  ;;  %2900 = vmatprep.subr.mxu0 %v4907_v22 }
 0x5d5   :  { %1575 = vmatpush1.msra.mxu1 %v4236_v18  ;;  %2901 = vmatpush3.msra.mxu0 %v4242_v23 }
 0x5d6   :  { %1576 = vmatprep.subr.mxu1 %v4248_v20  ;;  %2902 = vmatprep.subr.mxu0 %v4907_v22 }
 0x5d7   :  { %1577 = vmatpush1.msra.mxu1 %v4255_v27  ;;  %2903 = vmatpush3.msra.mxu0 %v4261_v38 }
 0x5d8   :  { %1578 = vmatprep.subr.mxu1 %v4267_v58  ;;  %2904 = vmatprep.subr.mxu0 %v4907_v22 }
 0x5d9   :  { %1579 = vmatpush1.msra.mxu1 %v4274_v29  ;;  %2905 = vmatpush3.msra.mxu0 %v4280_v62 }
 0x5da   :  { %1580 = vmatprep.subr.mxu1 %v4286_v56  ;;  %2906 = vmatprep.subr.mxu0 %v4907_v22 }
 0x5db   :  { %1581 = vmatpush1.msra.mxu1 %v4293_v32  ;;  %2907 = vmatpush3.msra.mxu0 %v4486_v24 }
 0x5dc   :  { %1582 = vmatprep.subr.mxu1 %v4300_v16  ;;  %2908 = vmatprep.subr.mxu0 %v4907_v22 }
 0x5dd   :  { %1583 = vmatpush1.msra.mxu1 %v4307_v63  ;;  %2909 = vmatpush3.msra.mxu0 %v4495_v25 }
 0x5de   :  { %1584 = vmatprep.subr.mxu1 %v4314_v60  ;;  %2910 = vmatprep.subr.mxu0 %v4907_v22 }
 0x5df   :  { %1585 = vmatpush1.msra.mxu1 %v4321_v59  ;;  %2911 = vmatpush3.msra.mxu0 %v4504_v28 }
 0x5e0   :  { %1586 = vmatprep.subr.mxu1 %v4328_v0  ;;  %2912 = vmatprep.subr.mxu0 %v4907_v22 }
 0x5e1   :  { %1587 = vmatpush1.msra.mxu1 %v4335_v10  ;;  %2913 = vmatpush3.msra.mxu0 %v4513_v30 }
 0x5e2   :  { %1588 = vmatprep.subr.mxu1 %v4342_v1  ;;  %2914 = vmatprep.subr.mxu0 %v4907_v22 }
 0x5e3   :  { %1589 = vmatpush1.msra.mxu1 %v4349_v34  ;;  %2915 = vmatpush3.msra.mxu0 %v4522_v33 }
 0x5e4   :  { %1590 = vmatprep.subr.mxu1 %v4356_v2  ;;  %2916 = vmatprep.subr.mxu0 %v4907_v22 }
 0x5e5   :  { %1591 = vmatpush1.msra.mxu1 %v4363_v12  ;;  %2917 = vmatpush3.msra.mxu0 %v4531_v35 }
 0x5e6   :  { %1592 = vmatprep.subr.mxu1 %v4370_v3  ;;  %2918 = vmatprep.subr.mxu0 %v4907_v22 }
 0x5e7   :  { %1593 = vmatpush1.msra.mxu1 %v4377_v17  ;;  %2919 = vmatpush3.msra.mxu0 %v4540_v36 }
 0x5e8   :  { %1594 = vmatprep.subr.mxu1 %v4384_v4  ;;  %2920 = vmatprep.subr.mxu0 %v4907_v22 }
 0x5e9   :  { %1595 = vmatpush1.msra.mxu1 %v4391_v31  ;;  %2921 = vmatpush3.msra.mxu0 %v4549_v39 }
 0x5ea   :  { %1596 = vmatprep.subr.mxu1 %v4398_v5  ;;  %2922 = vmatprep.subr.mxu0 %v4907_v22 }
 0x5eb   :  { %1597 = vmatpush1.msra.mxu1 %v4405_v11  ;;  %2923 = vmatpush3.msra.mxu0 %v4558_v40 }
 0x5ec   :  { %1598 = vmatprep.subr.mxu1 %v4412_v6  ;;  %2924 = vmatprep.subr.mxu0 %v4907_v22 }
 0x5ed   :  { %1599 = vmatpush1.msra.mxu1 %v4419_v13  ;;  %2925 = vmatpush3.msra.mxu0 %v4567_v14 }
 0x5ee   :  { %1600 = vmatprep.subr.mxu1 %v4426_v7  ;;  %2926 = vmatprep.subr.mxu0 %v4907_v22 }
 0x5ef   :  { %1601 = vmatpush1.msra.mxu1 %v4433_v19  ;;  %2927 = vmatpush3.msra.mxu0 %v4576_v41  ;;  %v4944_v41 = vld [vmem:[#allocation24_spill] sm:$0xff] }
 0x5f0   :  { %1602 = vmatprep.subr.mxu1 %v4440_v9  ;;  %2928 = vmatprep.subr.mxu0 %v4907_v22 }
 0x5f1   :  { %1603 = vmatpush1.msra.mxu1 %v4447_v21  ;;  %1636 = vmatprep.mubr.f32.mxu1 %v4907_v22 }
 0x5f2   :  { %2929 = vmatpush3.msra.mxu0 %v4586_v42  ;;  %2930 = vmatprep.mubr.msk.f32.mxu0 %vm3252_vm1, %v4907_v22 }
 0x5f3   :  { %1741 = vmatprep.subr.mxu1 %v4200_v15  ;;  %2933 = vmatprep.subr.mxu0 %v4907_v22 }
 0x692   :  { %v1469_v43 = vpop.f32.mrf.mxu1  ;;  %v1540_v44 = vpop.f32.mrf.mxu0 }
 0x693   :  { %v1544_v46 = vadd.f32 %v1469_v43, %v4942_v45  ;;  %v1558_v15 = vadd.f32 %v1540_v44, %v3968_v57  ;;  %v4945_v57 = vld [vmem:[#allocation17_spill] sm:$0xff]  ;;  %v1928_v44 = vld [vmem:[%s4851_s6 + $0x28] sm:$0xff] }
 0x694   :  { %v2897_v47 = vpop.f32.mrf.mxu0  ;;  %v1471_v49 = vpop.f32.mrf.mxu1 }
 0x695   :  { %v2374_v48 = vmul.f32 -1.442695, %v1544_v46  ;;  %v1551_v51 = vadd.f32 %v1471_v49, %v4943_v50 }
 0x697   :  { %3128 = vpow2.f32 %v2374_v48  ;;  %v2375_v52 = vmul.f32 -1.442695, %v1551_v51  ;;  %v1927_v51 = vld [vmem:[%s4851_s6 + $0x20] sm:$0xff] }
 0x699   :  { %3130 = vpow2.f32 %v2375_v52  ;;  %v1926_v52 = vld [vmem:[%s4851_s6 + $0x18] sm:$0xff] }
 0x6a4   :  { %v3129_v53 = vpop.eup %3128 }
 0x6a5   :  { %v1548_v54 = vadd.f32 1.0, %v3129_v53  ;;  %v1925_v53 = vld [vmem:[%s4851_s6 + $0x10] sm:$0xff] }
 0x6a6   :  { %v3131_v26 = vpop.eup %3130 }
 0x6a7   :  { %3132 = vrcp.f32 %v1548_v54  ;;  %v1555_v42 = vadd.f32 1.0, %v3131_v26  ;;  %v4946_v26 = vld [vmem:[#allocation18_spill] sm:$0xff]  ;;  %v4947_v54 = vld [vmem:[#allocation20_spill] sm:$0xff] }
 0x6a9   :  { %3134 = vrcp.f32 %v1555_v42  ;;  %v1929_v42 = vld [vmem:[%s4851_s6 + $0x30] sm:$0xff] }
 0x6b4   :  { %v3133_v21 = vpop.eup %3132 }
 0x6b5   :  { %v1559_v9 = vmul.f32 %v3133_v21, %v1558_v15  ;;  %v1918_v21 = vld [vmem:[%s4846_s1 + $0x18] sm:$0xff]  ;;  %v1924_v15 = vld [vmem:[%s4851_s6 + $0x8] sm:$0xff] }
 0x6b6   :  { %v3135_v45 = vpop.eup %3134 }
 0x6b7   :  { %v1560_v43 = vadd.f32 %v1559_v9, %v4944_v41  ;;  %v1562_v46 = vsub.f32 1.0, %v3135_v45  ;;  %v1564_v49 = vmul.f32 %v3135_v45, %v4461_v8  ;;  %v1936_v9 = vld [vmem:[%s4851_s6 + $0x68] sm:$0xff]  ;;  %v1930_v41 = vld [vmem:[%s4851_s6 + $0x38] sm:$0xff] }
 0x6b8   :  { %v1908_v45 = vld [vmem:[#allocation6 + $0x8] sm:$0xff] }
 0x6b9   :  { %3136 = vtanh.f32 %v1560_v43  ;;  %v1923_v43 = vld [vmem:[%s4851_s6] sm:$0xff] }
 0x6c6   :  { %v3137_v47 = vpop.eup %3136 }
 0x6c7   :  { %v1563_v48 = vmul.f32 %v3137_v47, %v1562_v46  ;;  %v4952_v46 = vld [vmem:[#allocation11_spill] sm:$0xff]  ;;  %v4953_v47 = vld [vmem:[#allocation12_spill] sm:$0xff] }
 0x6c9   :  { %v4598_v50 = vadd.f32 %v1564_v49, %v1563_v48  ;;  %v2208_v48 = vld [vmem:[%s4853_s8 + $0x78] sm:$0xff]  ;;  %v2207_v49 = vld [vmem:[%s4853_s8 + $0x70] sm:$0xff] }
 0x6cb   :  { %1567 = vst [vmem:[#allocation6 + $0x28] sm:$0xff] %v4598_v50  ;;  %1637 = vmatmul.mubr.f32.vlgmr.msra.gmra.mxu1 %v4598_v50  ;;  %2931 = vmatmul.mubr.f32.vlgmr.msra.gmra.mxu0 %v4598_v50 }
 0x6cc   :  { %1742 = vmatpush1.msra.mxu1 %v4217_v55  ;;  %2934 = vmatpush3.msra.mxu0 %v4223_v61  ;;  %v4948_v55 = vld [vmem:[#allocation10_spill] sm:$0xff]  ;;  %v1940_v61 = vld [vmem:[%s4852_s7 + $0x8] sm:$0xff] }
 0x6cd   :  { %1743 = vmatprep.subr.mxu1 %v4229_v37  ;;  %2935 = vmatprep.subr.mxu0 %v4907_v22 }
 0x6ce   :  { %1744 = vmatpush1.msra.mxu1 %v4236_v18  ;;  %2936 = vmatpush3.msra.mxu0 %v4242_v23  ;;  %v4949_v23 = vld [vmem:[#allocation34_spill] sm:$0xff] }
 0x6cf   :  { %1745 = vmatprep.subr.mxu1 %v4248_v20  ;;  %2937 = vmatprep.subr.mxu0 %v4907_v22 }
 0x6d0   :  { %1746 = vmatpush1.msra.mxu1 %v4255_v27  ;;  %2938 = vmatpush3.msra.mxu0 %v4261_v38 }
 0x6d1   :  { %1747 = vmatprep.subr.mxu1 %v4267_v58  ;;  %2939 = vmatprep.subr.mxu0 %v4907_v22 }
 0x6d2   :  { %1748 = vmatpush1.msra.mxu1 %v4274_v29  ;;  %2940 = vmatpush3.msra.mxu0 %v4280_v62  ;;  %v4950_v29 = vld [vmem:[#allocation35_spill] sm:$0xff] }
 0x6d3   :  { %1749 = vmatprep.subr.mxu1 %v4286_v56  ;;  %2941 = vmatprep.subr.mxu0 %v4907_v22 }
 0x6d4   :  { %1750 = vmatpush1.msra.mxu1 %v4293_v32  ;;  %2942 = vmatpush3.msra.mxu0 %v4486_v24  ;;  %v1919_v24 = vld [vmem:[%s4846_s1 + $0x20] sm:$0xff] }
 0x6d5   :  { %1751 = vmatprep.subr.mxu1 %v4300_v16  ;;  %2943 = vmatprep.subr.mxu0 %v4907_v22 }
 0x6d6   :  { %1752 = vmatpush1.msra.mxu1 %v4307_v63  ;;  %2944 = vmatpush3.msra.mxu0 %v4495_v25  ;;  %v1935_v25 = vld [vmem:[%s4851_s6 + $0x60] sm:$0xff] }
 0x6d7   :  { %1753 = vmatprep.subr.mxu1 %v4314_v60  ;;  %2945 = vmatprep.subr.mxu0 %v4907_v22  ;;  %v4676_v60 = vld [vmem:[%s4854_s9 + $0x12] ss:$0 sm:$0xff] }
 0x6d8   :  { %1754 = vmatpush1.msra.mxu1 %v4321_v59  ;;  %2946 = vmatpush3.msra.mxu0 %v4504_v28  ;;  %v1934_v28 = vld [vmem:[%s4851_s6 + $0x58] sm:$0xff] }
 0x6d9   :  { %1755 = vmatprep.subr.mxu1 %v4328_v0  ;;  %2947 = vmatprep.subr.mxu0 %v4907_v22 }
 0x6da   :  { %1756 = vmatpush1.msra.mxu1 %v4335_v10  ;;  %2948 = vmatpush3.msra.mxu0 %v4513_v30  ;;  %v1920_v30 = vld [vmem:[%s4846_s1 + $0x28] sm:$0xff] }
 0x6db   :  { %1757 = vmatprep.subr.mxu1 %v4342_v1  ;;  %2949 = vmatprep.subr.mxu0 %v4907_v22  ;;  %v4951_v1 = vld [vmem:[#allocation30_spill] sm:$0xff] }
 0x6dc   :  { %1758 = vmatpush1.msra.mxu1 %v4349_v34  ;;  %2950 = vmatpush3.msra.mxu0 %v4522_v33  ;;  %v1921_v33 = vld [vmem:[%s4846_s1 + $0x30] sm:$0xff] }
 0x6dd   :  { %1759 = vmatprep.subr.mxu1 %v4356_v2  ;;  %2951 = vmatprep.subr.mxu0 %v4907_v22 }
 0x6de   :  { %1760 = vmatpush1.msra.mxu1 %v4363_v12  ;;  %2952 = vmatpush3.msra.mxu0 %v4531_v35  ;;  %v1933_v35 = vld [vmem:[%s4851_s6 + $0x50] sm:$0xff] }
 0x6df   :  { %1761 = vmatprep.subr.mxu1 %v4370_v3  ;;  %2953 = vmatprep.subr.mxu0 %v4907_v22 }
 0x6e0   :  { %1762 = vmatpush1.msra.mxu1 %v4377_v17  ;;  %2954 = vmatpush3.msra.mxu0 %v4540_v36  ;;  %v1932_v36 = vld [vmem:[%s4851_s6 + $0x48] sm:$0xff] }
 0x6e1   :  { %1763 = vmatprep.subr.mxu1 %v4384_v4  ;;  %2955 = vmatprep.subr.mxu0 %v4907_v22 }
 0x6e2   :  { %1764 = vmatpush1.msra.mxu1 %v4391_v31  ;;  %2956 = vmatpush3.msra.mxu0 %v4549_v39  ;;  %v1922_v39 = vld [vmem:[%s4846_s1 + $0x38] sm:$0xff] }
 0x6e3   :  { %1765 = vmatprep.subr.mxu1 %v4398_v5  ;;  %2957 = vmatprep.subr.mxu0 %v4907_v22  ;;  %v1915_v5 = vld [vmem:[%s4846_s1] sm:$0xff] }
 0x6e4   :  { %1766 = vmatpush1.msra.mxu1 %v4405_v11  ;;  %2958 = vmatpush3.msra.mxu0 %v4558_v40  ;;  %v1939_v11 = vld [vmem:[%s4852_s7] sm:$0xff] }
 0x6e5   :  { %1767 = vmatprep.subr.mxu1 %v4412_v6  ;;  %2959 = vmatprep.subr.mxu0 %v4907_v22  ;;  %v1938_v6 = vld [vmem:[%s4851_s6 + $0x78] sm:$0xff]  ;;  %v1931_v40 = vld [vmem:[%s4851_s6 + $0x40] sm:$0xff] }
 0x6e6   :  { %1768 = vmatpush1.msra.mxu1 %v4419_v13  ;;  %2960 = vmatpush3.msra.mxu0 %v4567_v14  ;;  %v1916_v13 = vld [vmem:[%s4846_s1 + $0x8] sm:$0xff]  ;;  %v1907_v14 = vld [vmem:[#allocation6] sm:$0xff] }
 0x6e7   :  { %1769 = vmatprep.subr.mxu1 %v4426_v7  ;;  %2961 = vmatprep.subr.mxu0 %v4907_v22  ;;  %v1917_v7 = vld [vmem:[%s4846_s1 + $0x10] sm:$0xff] }
 0x6e8   :  { %1770 = vmatpush1.msra.mxu1 %v4433_v19  ;;  %2962 = vmatpush3.msra.mxu0 %v4945_v57  ;;  %v1937_v19 = vld [vmem:[%s4851_s6 + $0x70] sm:$0xff]  ;;  %v2204_v57 = vld [vmem:[%s4853_s8 + $0x58] sm:$0xff] }
 0x6e9   :  { %1771 = vmatprep.subr.mxu1 %v4946_v26  ;;  %2963 = vmatprep.subr.mxu0 %v4907_v22  ;;  %v2203_v26 = vld [vmem:[%s4853_s8 + $0x50] sm:$0xff] }
 0x6ea   :  { %1772 = vmatpush1.msra.mxu1 %v4947_v54  ;;  %1805 = vmatprep.mubr.f32.mxu1 %v4907_v22  ;;  %v2202_v54 = vld [vmem:[%s4853_s8 + $0x48] sm:$0xff] }
 0x6eb   :  { %2964 = vmatpush3.msra.mxu0 %v4948_v55  ;;  %2965 = vmatprep.mubr.msk.f32.mxu0 %vm3252_vm1, %v4907_v22  ;;  %v2201_v55 = vld [vmem:[%s4853_s8 + $0x40] sm:$0xff] }
 0x6ec   :  { %2968 = vmatprep.subr.mxu1 %v1940_v61  ;;  %3028 = vmatprep.subr.mxu0 %v2208_v48 }
 0x78b   :  { %v1638_v37 = vpop.f32.mrf.mxu1  ;;  %v1709_v18 = vpop.f32.mrf.mxu0 }
 0x78c   :  { %v1713_v20 = vadd.f32 %v1638_v37, %v4949_v23  ;;  %v1727_v59 = vadd.f32 %v4676_v60, %v1709_v18  ;;  %v2199_v37 = vld [vmem:[%s4853_s8 + $0x30] sm:$0xff]  ;;  %v2198_v18 = vld [vmem:[%s4853_s8 + $0x28] sm:$0xff]  ;;  %v2197_v23 = vld [vmem:[%s4853_s8 + $0x20] sm:$0xff] }
 0x78d   :  { %v2932_v27 = vpop.f32.mrf.mxu0  ;;  %v1640_v58 = vpop.f32.mrf.mxu1 }
 0x78e   :  { %v2376_v38 = vmul.f32 -1.442695, %v1713_v20  ;;  %v1720_v62 = vadd.f32 %v1640_v58, %v4950_v29  ;;  %v2196_v20 = vld [vmem:[%s4853_s8 + $0x18] sm:$0xff]  ;;  %v2195_v27 = vld [vmem:[%s4853_s8 + $0x10] sm:$0xff]  ;;  %v2193_v58 = vld [vmem:[%s4853_s8] sm:$0xff] }
 0x790   :  { %3138 = vpow2.f32 %v2376_v38  ;;  %v2377_v56 = vmul.f32 -1.442695, %v1720_v62  ;;  %v2194_v38 = vld [vmem:[%s4853_s8 + $0x8] sm:$0xff] }
 0x792   :  { %3140 = vpow2.f32 %v2377_v56  ;;  %v4954_v56 = vld [vmem:[#allocation36_spill] sm:$0xff] }
 0x79d   :  { %v3139_v32 = vpop.eup %3138 }
 0x79e   :  { %v1717_v16 = vadd.f32 1.0, %v3139_v32 }
 0x79f   :  { %v3141_v22 = vpop.eup %3140 }
 0x7a0   :  { %3142 = vrcp.f32 %v1717_v16  ;;  %v1724_v63 = vadd.f32 1.0, %v3141_v22 }
 0x7a2   :  { %3144 = vrcp.f32 %v1724_v63 }
 0x7ad   :  { %v3143_v0 = vpop.eup %3142 }
 0x7ae   :  { %v1728_v10 = vmul.f32 %v3143_v0, %v1727_v59  ;;  %v4955_v0 = vld [vmem:[#allocation37_spill] sm:$0xff] }
 0x7af   :  { %v3145_v2 = vpop.eup %3144 }
 0x7b0   :  { %v1729_v34 = vadd.f32 %v1728_v10, %v4951_v1  ;;  %v1731_v12 = vsub.f32 1.0, %v3145_v2  ;;  %v1733_v4 = vmul.f32 %v3145_v2, %v4598_v50 }
 0x7b2   :  { %3146 = vtanh.f32 %v1729_v34 }
 0x7bf   :  { %v3147_v3 = vpop.eup %3146 }
 0x7c0   :  { %v1732_v17 = vmul.f32 %v3147_v3, %v1731_v12 }
 0x7c2   :  { %v4681_v31 = vadd.f32 %v1733_v4, %v1732_v17 }
 0x7c4   :  { %1736 = vst [vmem:[#allocation6 + $0x30] sm:$0xff] %v4681_v31  ;;  %1806 = vmatmul.mubr.f32.vlgmr.msra.gmra.mxu1 %v4681_v31  ;;  %2966 = vmatmul.mubr.f32.vlgmr.msra.gmra.mxu0 %v4681_v31 }
 0x7c5   :  { %2969 = vmatpush3.msra.mxu1 %v1940_v61  ;;  %2972 = vmatprep.mubr.msk.f32.mxu1 %vm1941_vm2, %v1915_v5  ;;  %v2200_v61 = vld [vmem:[%s4853_s8 + $0x38] sm:$0xff] }
 0x7c6   :  { %2970 = vmatprep.subr.mxu1 %v1939_v11  ;;  %3029 = vmatpush3.msra.mxu0 %v2208_v48 }
 0x7c7   :  { %2971 = vmatpush3.msra.mxu1 %v1939_v11  ;;  %3030 = vmatprep.subr.mxu0 %v2207_v49 }
 0x7c8   :  { %2984 = vmatprep.subr.mxu1 %v1938_v6  ;;  %2973 = vmatmul.mubr.msk.f32.vlgmr.msra.gmra.mxu1 %vm1941_vm2, %v1916_v13 }
 0x7c9   :  { %2985 = vmatpush3.msra.mxu1 %v1938_v6  ;;  %2975 = vmatprep.mubr.msk.f32.mxu1 %vm1941_vm2, %v1917_v7 }
 0x7ca   :  { %2986 = vmatprep.subr.mxu1 %v1937_v19  ;;  %3031 = vmatpush3.msra.mxu0 %v2207_v49 }
 0x7cb   :  { %2987 = vmatpush3.msra.mxu1 %v1937_v19 }
 0x7cc   :  { %2988 = vmatprep.subr.mxu1 %v1936_v9  ;;  %2976 = vmatmul.mubr.msk.f32.gmra.mxu1 %vm1941_vm2, %v1918_v21 }
 0x7cd   :  { %2989 = vmatpush3.msra.mxu1 %v1936_v9  ;;  %2978 = vmatprep.mubr.msk.f32.mxu1 %vm1941_vm2, %v1919_v24 }
 0x7ce   :  { %2990 = vmatprep.subr.mxu1 %v1935_v25 }
 0x7cf   :  { %2991 = vmatpush3.msra.mxu1 %v1935_v25  ;;  %v4956_v25 = vld [vmem:[#allocation28_spill] sm:$0xff] }
 0x7d0   :  { %2992 = vmatprep.subr.mxu1 %v1934_v28  ;;  %2979 = vmatmul.mubr.msk.f32.gmra.mxu1 %vm1941_vm2, %v1920_v30 }
 0x7d1   :  { %2993 = vmatpush3.msra.mxu1 %v1934_v28  ;;  %2981 = vmatprep.mubr.msk.f32.mxu1 %vm1941_vm2, %v1921_v33  ;;  %v2176_v33 = vld [vmem:[%s4854_s9 + $0x3] ss:$0 sm:$0xff] }
 0x7d2   :  { %2994 = vmatprep.subr.mxu1 %v1933_v35 }
 0x7d3   :  { %2995 = vmatpush3.msra.mxu1 %v1933_v35 }
 0x7d4   :  { %2996 = vmatprep.subr.mxu1 %v1932_v36  ;;  %2982 = vmatmul.mubr.msk.f32.gmra.mxu1 %vm1941_vm2, %v1922_v39 }
 0x7d5   :  { %2997 = vmatpush3.msra.mxu1 %v1932_v36  ;;  %3016 = vmatprep.mubr.f32.mxu1 %v1907_v14 }
 0x7d6   :  { %2998 = vmatprep.subr.mxu1 %v1931_v40 }
 0x7d7   :  { %2999 = vmatpush3.msra.mxu1 %v1931_v40 }
 0x7d8   :  { %3000 = vmatprep.subr.mxu1 %v1930_v41 }
 0x7d9   :  { %3001 = vmatpush3.msra.mxu1 %v1930_v41 }
 0x7da   :  { %3002 = vmatprep.subr.mxu1 %v1929_v42 }
 0x7db   :  { %3003 = vmatpush3.msra.mxu1 %v1929_v42 }
 0x7dc   :  { %3004 = vmatprep.subr.mxu1 %v1928_v44 }
 0x7dd   :  { %3005 = vmatpush3.msra.mxu1 %v1928_v44 }
 0x7de   :  { %3006 = vmatprep.subr.mxu1 %v1927_v51 }
 0x7df   :  { %3007 = vmatpush3.msra.mxu1 %v1927_v51 }
 0x7e0   :  { %3008 = vmatprep.subr.mxu1 %v1926_v52 }
 0x7e1   :  { %3009 = vmatpush3.msra.mxu1 %v1926_v52 }
 0x7e2   :  { %3010 = vmatprep.subr.mxu1 %v1925_v53 }
 0x7e3   :  { %3011 = vmatpush3.msra.mxu1 %v1925_v53 }
 0x7e4   :  { %3012 = vmatprep.subr.mxu1 %v1924_v15 }
 0x7e5   :  { %3013 = vmatpush3.msra.mxu1 %v1924_v15 }
 0x7e6   :  { %3014 = vmatprep.subr.mxu1 %v1923_v43 }
 0x7e7   :  { %3015 = vmatpush3.msra.mxu1 %v1923_v43 }
 0x7e8   :  { %3017 = vmatmul.mubr.f32.vlgmr.msra.gmra.mxu1 %v1908_v45 }
 0x7e9   :  { %3019 = vmatprep.mubr.f32.mxu1 %v4952_v46 }
 0x7ec   :  { %3020 = vmatmul.mubr.f32.gmra.mxu1 %v4953_v47 }
 0x7ed   :  { %3022 = vmatprep.mubr.f32.mxu1 %v4461_v8  ;;  %v2206_v8 = vld [vmem:[%s4853_s8 + $0x68] sm:$0xff] }
 0x7ee   :  { %3032 = vmatprep.subr.mxu0 %v2206_v8 }
 0x7ef   :  { %3033 = vmatpush3.msra.mxu0 %v2206_v8 }
 0x7f0   :  { %3023 = vmatmul.mubr.f32.gmra.mxu1 %v4598_v50  ;;  %v2205_v50 = vld [vmem:[%s4853_s8 + $0x60] sm:$0xff] }
 0x7f1   :  { %3025 = vmatprep.mubr.f32.mxu1 %v4681_v31  ;;  %3034 = vmatprep.subr.mxu0 %v2205_v50 }
 0x7f2   :  { %3035 = vmatpush3.msra.mxu0 %v2205_v50 }
 0x7f3   :  { %3036 = vmatprep.subr.mxu0 %v2204_v57 }
 0x7f4   :  { %3037 = vmatpush3.msra.mxu0 %v2204_v57 }
 0x7f5   :  { %3038 = vmatprep.subr.mxu0 %v2203_v26 }
 0x7f6   :  { %3039 = vmatpush3.msra.mxu0 %v2203_v26 }
 0x7f7   :  { %3040 = vmatprep.subr.mxu0 %v2202_v54 }
 0x7f8   :  { %3041 = vmatpush3.msra.mxu0 %v2202_v54 }
 0x7f9   :  { %3042 = vmatprep.subr.mxu0 %v2201_v55 }
 0x7fa   :  { %3043 = vmatpush3.msra.mxu0 %v2201_v55 }
 0x7fb   :  { %3044 = vmatprep.subr.mxu0 %v2200_v61 }
 0x7fc   :  { %3045 = vmatpush3.msra.mxu0 %v2200_v61 }
 0x7fd   :  { %3046 = vmatprep.subr.mxu0 %v2199_v37 }
 0x7fe   :  { %3047 = vmatpush3.msra.mxu0 %v2199_v37 }
 0x7ff   :  { %3048 = vmatprep.subr.mxu0 %v2198_v18 }
 0x800   :  { %3049 = vmatpush3.msra.mxu0 %v2198_v18 }
 0x801   :  { %3050 = vmatprep.subr.mxu0 %v2197_v23 }
 0x802   :  { %3051 = vmatpush3.msra.mxu0 %v2197_v23  ;;  %v2209_v23 = vld [vmem:[%s4854_s9 + $0x4] ss:$0 sm:$0xff]  ;;  %s3253_s9 = smov [#allocation6]  }
 0x803   :  { %3052 = vmatprep.subr.mxu0 %v2196_v20  ;;  %s2340_s23 = sshll.u32 %s3253_s9, 4  ;;  %s2341_s23 = int_to_ptr.vmem [resolvable:$true] %s2340_s23 }
 0x804   :  { %3053 = vmatpush3.msra.mxu0 %v2196_v20  ;;  %s3207_s24 = scalar_lea.vmem %s2341_s23, 1024  ;;  %p3212_p1 = scmp.lt.s32.totalorder %s2341_s23, %s2341_s23 }
 0x805   :  { %3054 = vmatprep.subr.mxu0 %v2195_v27  ;;  %p3208_p0 = scmp.ne.s32.totalorder %s2341_s23, %s3207_s24  ;;  %p3213_p2 = scmp.lt.s32.totalorder %s3207_s24, %s3207_s24 }
 0x806   :  { %3055 = vmatpush3.msra.mxu0 %v2195_v27 }
 0x807   :  { %3056 = vmatprep.subr.mxu0 %v2194_v38  ;;  %p3214_p3 = por %p3213_p2, %p3212_p1 }
 0x808   :  { %3057 = vmatpush3.msra.mxu0 %v2194_v38 }
 0x809   :  { %3058 = vmatprep.subr.mxu0 %v2193_v58  ;;  %p3215_p4 = pnand %p3214_p3, %p3208_p0 }
 0x80a   :  { %3059 = vmatpush3.msra.mxu0 %v2193_v58 }
 0x884   :  { %v1807_v29 = vpop.f32.mrf.mxu1  ;;  %v1878_v62 = vpop.f32.mrf.mxu0 }
 0x885   :  { %v1882_v32 = vadd.f32 %v1807_v29, %v4954_v56  ;;  %v1896_v19 = vadd.f32 %v4676_v60, %v1878_v62 }
 0x886   :  { %v1809_v16 = vpop.f32.mrf.mxu1  ;;  %v2967_v22 = vpop.f32.mrf.mxu0 }
 0x887   :  { %v2378_v63 = vmul.f32 -1.442695, %v1882_v32  ;;  %v1889_v10 = vadd.f32 %v1809_v16, %v4955_v0 }
 0x888   :  { %v2974_v59 = vpop.f32.mrf.mxu1 }
 0x889   :  { %3148 = vpow2.f32 %v2378_v63  ;;  %v2379_v34 = vmul.f32 -1.442695, %v1889_v10 }
 0x88a   :  { %v2032_v1 = vpop.f32.mrf.mxu1 }
 0x88b   :  { %3150 = vpow2.f32 %v2379_v34 }
 0x88c   :  { %v2977_v2 = vpop.f32.mrf.mxu1 }
 0x88e   :  { %v2042_v12 = vpop.f32.mrf.mxu1 }
 0x890   :  { %v2980_v4 = vpop.f32.mrf.mxu1 }
 0x892   :  { %v2052_v5 = vpop.f32.mrf.mxu1 }
 0x894   :  { %v4824_v6 = vpop.f32.mrf.mxu1 }
 0x896   :  { %v3149_v3 = vpop.eup %3148  ;;  %v4826_v7 = vpop.f32.mrf.mxu1 }
 0x897   :  { %v1886_v17 = vadd.f32 1.0, %v3149_v3 }
 0x898   :  { %v3151_v11 = vpop.eup %3150 }
 0x899   :  { %3152 = vrcp.f32 %v1886_v17  ;;  %v1893_v13 = vadd.f32 1.0, %v3151_v11 }
 0x89b   :  { %3154 = vrcp.f32 %v1893_v13 }
 0x8a6   :  { %v3153_v9 = vpop.eup %3152 }
 0x8a7   :  { %v1897_v21 = vmul.f32 %v3153_v9, %v1896_v19 }
 0x8a8   :  { %v3018_v24 = vpop.f32.mrf.mxu1  ;;  %v3155_v48 = vpop.eup %3154 }
 0x8a9   :  { %v1898_v28 = vadd.f32 %v1897_v21, %v4956_v25  ;;  %v2143_v30 = vadd.f32 %v3018_v24, %v2974_v59  ;;  %v1900_v57 = vsub.f32 1.0, %v3155_v48  ;;  %v1902_v37 = vmul.f32 %v3155_v48, %v4681_v31 }
 0x8aa   :  { %v2137_v35 = vpop.f32.mrf.mxu1 }
 0x8ab   :  { %3156 = vtanh.f32 %v1898_v28  ;;  %v2138_v36 = vadd.f32 %v2137_v35, %v2032_v1  ;;  %v2178_v39 = vadd.f32 %v2176_v33, %v2143_v30 }
 0x8ac   :  { %v3021_v40 = vpop.f32.mrf.mxu1 }
 0x8ad   :  { %v2177_v14 = vadd.f32 %v2176_v33, %v2138_v36  ;;  %v2153_v41 = vadd.f32 %v3021_v40, %v2977_v2  ;;  %v2186_v51 = vmax.f32 %v2178_v39, 0.0 }
 0x8ae   :  { %v2147_v42 = vpop.f32.mrf.mxu1 }
 0x8af   :  { %v2185_v60 = vmax.f32 %v2177_v14, 0.0  ;;  %v2148_v44 = vadd.f32 %v2147_v42, %v2042_v12  ;;  %v2180_v52 = vadd.f32 %v2176_v33, %v2153_v41 }
 0x8b0   :  { %v3024_v53 = vpop.f32.mrf.mxu1 }
 0x8b1   :  { %v2179_v15 = vadd.f32 %v2176_v33, %v2148_v44  ;;  %v2163_v43 = vadd.f32 %v3024_v53, %v2980_v4  ;;  %3060 = vmatprep.mubr.f32.mxu0 %v2185_v60  ;;  %v2188_v49 = vmax.f32 %v2180_v52, 0.0 }
 0x8b2   :  { %v2157_v45 = vpop.f32.mrf.mxu1  ;;  %3061 = vmatmul.mubr.f32.vlgmr.msra.gmra.mxu0 %v2186_v51 }
 0x8b3   :  { %v2187_v46 = vmax.f32 %v2179_v15, 0.0  ;;  %v2158_v47 = vadd.f32 %v2157_v45, %v2052_v5  ;;  %v2182_v8 = vadd.f32 %v2176_v33, %v2163_v43 }
 0x8b5   :  { %v2181_v50 = vadd.f32 %v2176_v33, %v2158_v47  ;;  %3063 = vmatprep.mubr.f32.mxu0 %v2187_v46  ;;  %v2190_v55 = vmax.f32 %v2182_v8, 0.0 }
 0x8b6   :  { %3064 = vmatmul.mubr.f32.gmra.mxu0 %v2188_v49 }
 0x8b7   :  { %v2189_v26 = vmax.f32 %v2181_v50, 0.0 }
 0x8b8   :  { %v3157_v54 = vpop.eup %3156 }
 0x8b9   :  { %v1901_v61 = vmul.f32 %v3157_v54, %v1900_v57  ;;  %3066 = vmatprep.mubr.f32.mxu0 %v2189_v26 }
 0x8ba   :  { %3067 = vmatmul.mubr.f32.gmra.mxu0 %v2190_v55 }
 0x8bb   :  { %v1903_v18 = vadd.f32 %v1902_v37, %v1901_v61 }
 0x8bd   :  { %1905 = vst [vmem:[#allocation6 + $0x38] sm:$0xff] %v1903_v18  ;;  %3026 = vmatmul.mubr.f32.gmra.mxu1 %v1903_v18 }
 0x972   :  { %v3062_v20 = vpop.f32.mrf.mxu0 }
 0x973   :  { %v2282_v27 = vadd.f32 %v3062_v20, %v2209_v23 }
 0x974   :  { %v2276_v38 = vpop.f32.mrf.mxu0 }
 0x975   :  { %2316 = vst [vmem:[#allocation4 + $0x8] sm:$0xff] %v2282_v27  ;;  %v2277_v58 = vadd.f32 %v2276_v38, %v2209_v23 }
 0x976   :  { %v3065_v29 = vpop.f32.mrf.mxu0 }
 0x977   :  { %2315 = vst [vmem:[#allocation4] sm:$0xff] %v2277_v58  ;;  %v2292_v62 = vadd.f32 %v3065_v29, %v2209_v23 }
 0x978   :  { %v2286_v56 = vpop.f32.mrf.mxu0 }
 0x979   :  { %2318 = vst [vmem:[#allocation4 + $0x18] sm:$0xff] %v2292_v62  ;;  %v2287_v31 = vadd.f32 %v2286_v56, %v2209_v23 }
 0x97a   :  { %v3068_v32 = vpop.f32.mrf.mxu0 }
 0x97b   :  { %2317 = vst [vmem:[#allocation4 + $0x10] sm:$0xff] %v2287_v31  ;;  %v2302_v16 = vadd.f32 %v3068_v32, %v2209_v23 }
 0x97c   :  { %v2296_v22 = vpop.f32.mrf.mxu0 }
 0x97d   :  { %2320 = vst [vmem:[#allocation4 + $0x28] sm:$0xff] %v2302_v16  ;;  %v2297_v63 = vadd.f32 %v2296_v22, %v2209_v23  ;;  %v3027_v59 = vpop.f32.mrf.mxu1 }
 0x97e   :  { %v2173_v0 = vadd.f32 %v3027_v59, %v4824_v6 }
 0x97f   :  { %2319 = vst [vmem:[#allocation4 + $0x20] sm:$0xff] %v2297_v63  ;;  %v2167_v10 = vpop.f32.mrf.mxu1 }
 0x980   :  { %v2168_v1 = vadd.f32 %v2167_v10, %v4826_v7  ;;  %v2184_v34 = vadd.f32 %v2176_v33, %v2173_v0 }
 0x982   :  { %v2183_v2 = vadd.f32 %v2176_v33, %v2168_v1  ;;  %v2192_v3 = vmax.f32 %v2184_v34, 0.0 }
 0x984   :  { %v2191_v12 = vmax.f32 %v2183_v2, 0.0 }
 0x986   :  { %3069 = vmatprep.mubr.f32.mxu0 %v2191_v12 }
 0x987   :  { %3070 = vmatmul.mubr.f32.gmra.mxu0 %v2192_v3 }
 0x988   :  { %3218 = shalt.err (!%p3215_p4)
}
 0x989   :  { %s3254_s25 = smov 128   ;;  %s3255_s7 = smov 8  }
 0x98a   :  { %2346 = dma.vmem_to_hbm [thread:$0]  %s2341_s23, 1024, %s4856_s11, [#allocation7], %s3254_s25, %s3254_s25, %s3255_s7  }
 0x98b   :  { %s3256_s1 = smov [#allocation4]  }
 0x98c   :  { %s2328_s28 = sshll.u32 %s3256_s1, 4  ;;  %s2329_s28 = int_to_ptr.vmem [resolvable:$true] %s2328_s28 }
 0x98d   :  { %s3227_s29 = scalar_lea.vmem %s2329_s28, 1024  ;;  %p3232_p6 = scmp.lt.s32.totalorder %s2329_s28, %s2329_s28 }
 0x98e   :  { %p3228_p5 = scmp.ne.s32.totalorder %s2329_s28, %s3227_s29  ;;  %p3233_p7 = scmp.lt.s32.totalorder %s3227_s29, %s3227_s29 }
 0x990   :  { %p3234_p8 = por %p3233_p7, %p3232_p6 }
 0x992   :  { %p3235_p9 = pnand %p3234_p8, %p3228_p5 }
 0xa47   :  { %v3071_v17 = vpop.f32.mrf.mxu0 }
 0xa48   :  { %v2312_v4 = vadd.f32 %v3071_v17, %v2209_v23 }
 0xa49   :  { %v2306_v5 = vpop.f32.mrf.mxu0 }
 0xa4a   :  { %2322 = vst [vmem:[#allocation4 + $0x38] sm:$0xff] %v2312_v4  ;;  %v2307_v11 = vadd.f32 %v2306_v5, %v2209_v23 }
 0xa4c   :  { %2321 = vst [vmem:[#allocation4 + $0x30] sm:$0xff] %v2307_v11 }
 0xa4d   :  { %3238 = shalt.err (!%p3235_p9)
}
 0xa4e   :  { %2334 = dma.vmem_to_hbm [thread:$0]  %s2329_s28, 1024, %s4855_s10, [#allocation5], %s3254_s25, %s3254_s25, %s3255_s7  }
 0xa4f   :  { %3247 = dma.done.wait [#allocation5], 1024  }
 0xa50   :  { %3248 = vsyncadd [#allocation5], 4294966272 }
 0xa51   :  { %3249 = dma.done.wait [#allocation7], 1024  }
 0xa52   :  { %3250 = vsyncadd [#allocation7], 4294966272 }
 0xa53   :  { %2353 = vsyncpa [#allocation5], 1 }
 0xa54   :  { %2354 = vsyncpa [#allocation7], 1 }

</bundles_post_ra>
